<compile_context>
chip_gen: v6e
topology: v6e:2x2x1
jax: 0.10.0
libtpu: 0.0.40
codegen_flags: <defaults>
</compile_context>

<pallas_src>
import jax
import jax.numpy as jnp
from jax.experimental import pallas as pl
from jax.experimental.pallas import tpu as pltpu

LN_EPS = 1e-5
H1, H2, H3 = 512, 512, 256
TB_MAX = 256                     # batch tile (rows per grid step)


def _round_up(x, m):
    return ((x + m - 1) // m) * m


def _layernorm(x, gamma, beta):
    # Two-pass statistics: mean, then (x - mu)^2.  Biased variance, matches
    # torch.nn.LayerNorm; avoids E[x^2]-E[x]^2 cancellation in f32.
    n = x.shape[-1]
    mu = jnp.sum(x, axis=-1, keepdims=True) * (1.0 / n)
    d = x - mu
    var = jnp.sum(d * d, axis=-1, keepdims=True) * (1.0 / n)
    return d * jax.lax.rsqrt(var + LN_EPS) * gamma + beta


def _critic_kernel(sa_ref, w1_ref, w2_ref, w3_ref, v512_ref, v256_ref, q_ref):
    """One grid step == (one Q-branch, one batch tile).  grid = (2, nb)."""
    sa = sa_ref[...]              # (TB, D_pad) bf16, pre-cast in wrapper
    v512 = v512_ref[0]            # (6, 512) f32 rows: b1, g1, be1, b2, g2, be2
    v256 = v256_ref[0]            # (5, 256) f32 rows: b3, g3, be3, w4_row, b4

    # l1 -> ln1 -> relu   (dropout = identity in eval mode)
    h = jnp.dot(sa, w1_ref[0], preferred_element_type=jnp.float32) + v512[0:1, :]
    h = jnp.maximum(_layernorm(h, v512[1:2, :], v512[2:3, :]), 0.0)

    # l2 -> ln2 -> relu
    h = (jnp.dot(h.astype(jnp.bfloat16), w2_ref[0],
                 preferred_element_type=jnp.float32) + v512[3:4, :])
    h = jnp.maximum(_layernorm(h, v512[4:5, :], v512[5:6, :]), 0.0)

    # l3 -> ln3 -> relu
    h = (jnp.dot(h.astype(jnp.bfloat16), w3_ref[0],
                 preferred_element_type=jnp.float32) + v256[0:1, :])
    h = jnp.maximum(_layernorm(h, v256[1:2, :], v256[2:3, :]), 0.0)

    # l4: single output column.  Compute as w4_row (1,256) @ h^T (256,TB) via an
    # NT dot_general -> (1, TB) lane row, so the store is lane-dense.
    q = jax.lax.dot_general(v256[3:4, :], h, (((1,), (1,)), ((), ())),
                            preferred_element_type=jnp.float32)       # (1, TB)
    q_ref[...] = (q + v256[4:5, 0:1])[None]                           # (1,1,TB)


@jax.jit
def critic_forward(state, action, params):
    B, S = state.shape
    A = action.shape[1]
    d_in = S + A
    d_pad = params["w1"].shape[1]

    # Batch tiling: a single full-size tile for small B, 256-row tiles otherwise.
    if B <= TB_MAX:
        tb = _round_up(B, 8)
        b_pad = tb
    else:
        tb = TB_MAX
        b_pad = _round_up(B, TB_MAX)
    nb = b_pad // tb

    # Pre-concatenated, pre-padded, pre-cast bf16 state||action slab.
    sa = jnp.concatenate([state, action], axis=1).astype(jnp.bfloat16)
    sa = jnp.pad(sa, ((0, b_pad - B), (0, d_pad - d_in)))

    out = pl.pallas_call(
        _critic_kernel,
        out_shape=jax.ShapeDtypeStruct((2, 1, b_pad), jnp.float32),
        grid_spec=pltpu.PrefetchScalarGridSpec(
            num_scalar_prefetch=0,
            grid=(2, nb),                                    # (branch, batch)
            in_specs=[
                # activations: depend only on the batch index
                pl.BlockSpec((tb, d_pad), lambda i, b: (b, 0)),
                # weights / packed vecs: depend only on the branch index
                # -> VMEM-resident across all batch tiles of a branch
                pl.BlockSpec((1, d_pad, H1), lambda i, b: (i, 0, 0)),  # w1 bf16
                pl.BlockSpec((1, H1, H2), lambda i, b: (i, 0, 0)),     # w2 bf16
                pl.BlockSpec((1, H2, H3), lambda i, b: (i, 0, 0)),     # w3 bf16
                pl.BlockSpec((1, 6, H1), lambda i, b: (i, 0, 0)),      # vec slab
                pl.BlockSpec((1, 5, H3), lambda i, b: (i, 0, 0)),      # vec slab
            ],
            out_specs=pl.BlockSpec((1, 1, tb), lambda i, b: (i, 0, b)),
        ),
        compiler_params=pltpu.CompilerParams(
            dimension_semantics=("parallel", "parallel"),
            vmem_limit_bytes=32 * 1024 * 1024,
        ),
    )(sa, params["w1"], params["w2"], params["w3"],
      params["v512"], params["v256"])

    return out[0, 0, :B, None], out[1, 0, :B, None]    # q1, q2 : each (B, 1)


# ----------------------------- parameter setup -----------------------------

def _init_linear(key, fan_in, fan_out):
    # PyTorch nn.Linear default: U(-1/sqrt(fan_in), 1/sqrt(fan_in)).
    kw, kb = jax.random.split(key)
    bound = float(fan_in) ** -0.5
    w = jax.random.uniform(kw, (fan_in, fan_out), jnp.float32, -bound, bound)
    b = jax.random.uniform(kb, (fan_out,), jnp.float32, -bound, bound)
    return w, b


def init_critic_params(key, state_dim, action_dim):
    d_in = state_dim + action_dim
    d_pad = _round_up(d_in, 16)                 # bf16 sublane-friendly padding
    dims = [(d_in, H1), (H1, H2), (H2, H3), (H3, 1)]

    def one_branch(k):
        keys = jax.random.split(k, 4)
        return [_init_linear(kk, fi, fo) for (fi, fo), kk in zip(dims, keys)]

    k1, k2 = jax.random.split(key)
    branches = [one_branch(k1), one_branch(k2)]

    def stack(fn):
        return jnp.stack([fn(br) for br in branches], axis=0)

    # Merged + zero-padded layer-1 weight; all weights bf16, stacked on branch.
    def w1_of(br):
        return jnp.pad(br[0][0], ((0, d_pad - d_in), (0, 0)))

    w1 = stack(w1_of).astype(jnp.bfloat16)
    w2 = stack(lambda br: br[1][0]).astype(jnp.bfloat16)
    w3 = stack(lambda br: br[2][0]).astype(jnp.bfloat16)

    # Small vectors packed into f32 slabs (LN gamma=1, beta=0 at init).
    def v512_of(br):
        b1, b2 = br[0][1], br[1][1]
        return jnp.stack([b1, jnp.ones(H1, jnp.float32), jnp.zeros(H1, jnp.float32),
                          b2, jnp.ones(H2, jnp.float32), jnp.zeros(H2, jnp.float32)],
                         axis=0)

    def v256_of(br):
        b3 = br[2][1]
        w4_row = br[3][0][:, 0]                       # (256,)
        b4_row = jnp.zeros(H3, jnp.float32).at[0].set(br[3][1][0])
        return jnp.stack([b3, jnp.ones(H3, jnp.float32), jnp.zeros(H3, jnp.float32),
                          w4_row, b4_row], axis=0)

    return {"w1": w1, "w2": w2, "w3": w3,
            "v512": stack(v512_of).astype(jnp.float32),
            "v256": stack(v256_of).astype(jnp.float32)}


# ------------------------- pure-JAX reference check ------------------------

def _reference_branch(sa_bf16, w1, w2, w3, v512, v256):
    # Mirrors the kernel math (bf16 matmul inputs, f32 accumulation / LN).
    h = jnp.dot(sa_bf16, w1, preferred_element_type=jnp.float32) + v512[0:1]
    h = jnp.maximum(_layernorm(h, v512[1:2], v512[2:3]), 0.0)
    h = jnp.dot(h.astype(jnp.bfloat16), w2, preferred_element_type=jnp.float32) + v512[3:4]
    h = jnp.maximum(_layernorm(h, v512[4:5], v512[5:6]), 0.0)
    h = jnp.dot(h.astype(jnp.bfloat16), w3, preferred_element_type=jnp.float32) + v256[0:1]
    h = jnp.maximum(_layernorm(h, v256[1:2], v256[2:3]), 0.0)
    return jnp.sum(h * v256[3:4], axis=-1, keepdims=True) + v256[4, 0]


if __name__ == "__main__":
    key = jax.random.PRNGKey(0)
    state_dim, action_dim, batch = 12, 4, 8

    k_p, k_s, k_a = jax.random.split(key, 3)
    params = init_critic_params(k_p, state_dim, action_dim)
    state = jax.random.normal(k_s, (batch, state_dim), jnp.float32)
    action = jax.random.normal(k_a, (batch, action_dim), jnp.float32)

    q1, q2 = critic_forward(state, action, params)
    jax.block_until_ready((q1, q2))

    assert q1.shape == (batch, 1) and q2.shape == (batch, 1)

    # Build the same padded bf16 state||action slab for the reference.
    d_in = state_dim + action_dim
    d_pad = params["w1"].shape[1]
    sa_ref = jnp.concatenate([state, action], axis=1).astype(jnp.bfloat16)
    sa_ref = jnp.pad(sa_ref, ((0, 0), (0, d_pad - d_in)))

    r1 = _reference_branch(sa_ref, params["w1"][0], params["w2"][0],
                           params["w3"][0], params["v512"][0], params["v256"][0])
    r2 = _reference_branch(sa_ref, params["w1"][1], params["w2"][1],
                           params["w3"][1], params["v512"][1], params["v256"][1])
    assert jnp.allclose(q1, r1, rtol=2e-2, atol=2e-2)
    assert jnp.allclose(q2, r2, rtol=2e-2, atol=2e-2)

    print("KERNEL_OK")
</pallas_src>

<mosaic_0001>
module attributes {stable_mosaic.version = 11 : i64} {
  func.func @_critic_kernel(%arg0: i32, %arg1: i32, %arg2: memref<8x16xbf16, #tpu.memory_space<vmem>>, %arg3: memref<1x16x512xbf16, #tpu.memory_space<vmem>>, %arg4: memref<1x512x512xbf16, #tpu.memory_space<vmem>>, %arg5: memref<1x512x256xbf16, #tpu.memory_space<vmem>>, %arg6: memref<1x6x512xf32, #tpu.memory_space<vmem>>, %arg7: memref<1x5x256xf32, #tpu.memory_space<vmem>>, %arg8: memref<1x1x8xf32, #tpu.memory_space<vmem>>) attributes {dimension_semantics = [#tpu.dimension_semantics<parallel>, #tpu.dimension_semantics<parallel>], iteration_bounds = array<i64: 2, 1>, scalar_prefetch = 0 : i64, scratch_operands = 0 : i64, tpu.core_type = #tpu.core_type<tc>, window_params = [{transform_indices = @transform_0, window_bounds = array<i64: 8, 16>}, {transform_indices = @transform_1, window_bounds = array<i64: 1, 16, 512>}, {transform_indices = @transform_2, window_bounds = array<i64: 1, 512, 512>}, {transform_indices = @transform_3, window_bounds = array<i64: 1, 512, 256>}, {transform_indices = @transform_4, window_bounds = array<i64: 1, 6, 512>}, {transform_indices = @transform_5, window_bounds = array<i64: 1, 5, 256>}, {transform_indices = @transform_6, window_bounds = array<i64: 1, 1, 8>}]} {
    %c0 = arith.constant 0 : index
    %c0_0 = arith.constant 0 : index
    %0 = vector.load %arg2[%c0, %c0_0] : memref<8x16xbf16, #tpu.memory_space<vmem>>, vector<8x16xbf16>
    %c0_1 = arith.constant 0 : index
    %c0_2 = arith.constant 0 : index
    %c0_3 = arith.constant 0 : index
    %1 = vector.load %arg6[%c0_1, %c0_2, %c0_3] : memref<1x6x512xf32, #tpu.memory_space<vmem>>, vector<1x6x512xf32>
    %2 = vector.shape_cast %1 : vector<1x6x512xf32> to vector<6x512xf32>
    %c0_4 = arith.constant 0 : index
    %c0_5 = arith.constant 0 : index
    %c0_6 = arith.constant 0 : index
    %3 = vector.load %arg7[%c0_4, %c0_5, %c0_6] : memref<1x5x256xf32, #tpu.memory_space<vmem>>, vector<1x5x256xf32>
    %4 = vector.shape_cast %3 : vector<1x5x256xf32> to vector<5x256xf32>
    %c0_7 = arith.constant 0 : index
    %c0_8 = arith.constant 0 : index
    %c0_9 = arith.constant 0 : index
    %5 = vector.load %arg3[%c0_7, %c0_8, %c0_9] : memref<1x16x512xbf16, #tpu.memory_space<vmem>>, vector<1x16x512xbf16>
    %6 = vector.shape_cast %5 : vector<1x16x512xbf16> to vector<16x512xbf16>
    %cst = arith.constant dense<0.000000e+00> : vector<8x512xf32>
    %7 = tpu.matmul %0, %6, %cst {dimension_numbers = #tpu.dot_dimension_numbers<[1], [0], [0], [1], [0, 0, 1, 1], [], []>} : vector<8x16xbf16>, vector<16x512xbf16>, vector<8x512xf32> -> vector<8x512xf32>
    %8 = vector.extract_strided_slice %2 {offsets = [0, 0], sizes = [1, 512], strides = [1, 1]} : vector<6x512xf32> to vector<1x512xf32>
    %9 = vector.broadcast %8 : vector<1x512xf32> to vector<8x512xf32>
    %10 = arith.addf %7, %9 : vector<8x512xf32>
    %11 = vector.extract_strided_slice %2 {offsets = [1, 0], sizes = [1, 512], strides = [1, 1]} : vector<6x512xf32> to vector<1x512xf32>
    %12 = vector.extract_strided_slice %2 {offsets = [2, 0], sizes = [1, 512], strides = [1, 1]} : vector<6x512xf32> to vector<1x512xf32>
    %cst_10 = arith.constant dense<0.000000e+00> : vector<8xf32>
    %13 = vector.multi_reduction <add>, %10, %cst_10 [1] : vector<8x512xf32> to vector<8xf32>
    %14 = vector.shape_cast %13 : vector<8xf32> to vector<8x1xf32>
    %cst_11 = arith.constant 0.001953125 : f32
    %15 = vector.broadcast %cst_11 : f32 to vector<8x1xf32>
    %16 = arith.mulf %14, %15 : vector<8x1xf32>
    %17 = vector.broadcast %16 : vector<8x1xf32> to vector<8x512xf32>
    %18 = arith.subf %10, %17 : vector<8x512xf32>
    %19 = arith.mulf %18, %18 : vector<8x512xf32>
    %cst_12 = arith.constant dense<0.000000e+00> : vector<8xf32>
    %20 = vector.multi_reduction <add>, %19, %cst_12 [1] : vector<8x512xf32> to vector<8xf32>
    %21 = vector.shape_cast %20 : vector<8xf32> to vector<8x1xf32>
    %cst_13 = arith.constant 0.001953125 : f32
    %22 = vector.broadcast %cst_13 : f32 to vector<8x1xf32>
    %23 = arith.mulf %21, %22 : vector<8x1xf32>
    %cst_14 = arith.constant 9.99999974E-6 : f32
    %24 = vector.broadcast %cst_14 : f32 to vector<8x1xf32>
    %25 = arith.addf %23, %24 : vector<8x1xf32>
    %26 = math.rsqrt %25 : vector<8x1xf32>
    %27 = vector.broadcast %26 : vector<8x1xf32> to vector<8x512xf32>
    %28 = arith.mulf %18, %27 : vector<8x512xf32>
    %29 = vector.broadcast %11 : vector<1x512xf32> to vector<8x512xf32>
    %30 = arith.mulf %28, %29 : vector<8x512xf32>
    %31 = vector.broadcast %12 : vector<1x512xf32> to vector<8x512xf32>
    %32 = arith.addf %30, %31 : vector<8x512xf32>
    %cst_15 = arith.constant 0.000000e+00 : f32
    %33 = vector.broadcast %cst_15 : f32 to vector<8x512xf32>
    %34 = arith.maximumf %32, %33 : vector<8x512xf32>
    %35 = arith.truncf %34 : vector<8x512xf32> to vector<8x512xbf16>
    %c0_16 = arith.constant 0 : index
    %c0_17 = arith.constant 0 : index
    %c0_18 = arith.constant 0 : index
    %36 = vector.load %arg4[%c0_16, %c0_17, %c0_18] : memref<1x512x512xbf16, #tpu.memory_space<vmem>>, vector<1x512x512xbf16>
    %37 = vector.shape_cast %36 : vector<1x512x512xbf16> to vector<512x512xbf16>
    %cst_19 = arith.constant dense<0.000000e+00> : vector<8x512xf32>
    %38 = tpu.matmul %35, %37, %cst_19 {dimension_numbers = #tpu.dot_dimension_numbers<[1], [0], [0], [1], [0, 0, 1, 1], [], []>} : vector<8x512xbf16>, vector<512x512xbf16>, vector<8x512xf32> -> vector<8x512xf32>
    %39 = vector.extract_strided_slice %2 {offsets = [3, 0], sizes = [1, 512], strides = [1, 1]} : vector<6x512xf32> to vector<1x512xf32>
    %40 = vector.broadcast %39 : vector<1x512xf32> to vector<8x512xf32>
    %41 = arith.addf %38, %40 : vector<8x512xf32>
    %42 = vector.extract_strided_slice %2 {offsets = [4, 0], sizes = [1, 512], strides = [1, 1]} : vector<6x512xf32> to vector<1x512xf32>
    %43 = vector.extract_strided_slice %2 {offsets = [5, 0], sizes = [1, 512], strides = [1, 1]} : vector<6x512xf32> to vector<1x512xf32>
    %cst_20 = arith.constant dense<0.000000e+00> : vector<8xf32>
    %44 = vector.multi_reduction <add>, %41, %cst_20 [1] : vector<8x512xf32> to vector<8xf32>
    %45 = vector.shape_cast %44 : vector<8xf32> to vector<8x1xf32>
    %cst_21 = arith.constant 0.001953125 : f32
    %46 = vector.broadcast %cst_21 : f32 to vector<8x1xf32>
    %47 = arith.mulf %45, %46 : vector<8x1xf32>
    %48 = vector.broadcast %47 : vector<8x1xf32> to vector<8x512xf32>
    %49 = arith.subf %41, %48 : vector<8x512xf32>
    %50 = arith.mulf %49, %49 : vector<8x512xf32>
    %cst_22 = arith.constant dense<0.000000e+00> : vector<8xf32>
    %51 = vector.multi_reduction <add>, %50, %cst_22 [1] : vector<8x512xf32> to vector<8xf32>
    %52 = vector.shape_cast %51 : vector<8xf32> to vector<8x1xf32>
    %cst_23 = arith.constant 0.001953125 : f32
    %53 = vector.broadcast %cst_23 : f32 to vector<8x1xf32>
    %54 = arith.mulf %52, %53 : vector<8x1xf32>
    %cst_24 = arith.constant 9.99999974E-6 : f32
    %55 = vector.broadcast %cst_24 : f32 to vector<8x1xf32>
    %56 = arith.addf %54, %55 : vector<8x1xf32>
    %57 = math.rsqrt %56 : vector<8x1xf32>
    %58 = vector.broadcast %57 : vector<8x1xf32> to vector<8x512xf32>
    %59 = arith.mulf %49, %58 : vector<8x512xf32>
    %60 = vector.broadcast %42 : vector<1x512xf32> to vector<8x512xf32>
    %61 = arith.mulf %59, %60 : vector<8x512xf32>
    %62 = vector.broadcast %43 : vector<1x512xf32> to vector<8x512xf32>
    %63 = arith.addf %61, %62 : vector<8x512xf32>
    %cst_25 = arith.constant 0.000000e+00 : f32
    %64 = vector.broadcast %cst_25 : f32 to vector<8x512xf32>
    %65 = arith.maximumf %63, %64 : vector<8x512xf32>
    %66 = arith.truncf %65 : vector<8x512xf32> to vector<8x512xbf16>
    %c0_26 = arith.constant 0 : index
    %c0_27 = arith.constant 0 : index
    %c0_28 = arith.constant 0 : index
    %67 = vector.load %arg5[%c0_26, %c0_27, %c0_28] : memref<1x512x256xbf16, #tpu.memory_space<vmem>>, vector<1x512x256xbf16>
    %68 = vector.shape_cast %67 : vector<1x512x256xbf16> to vector<512x256xbf16>
    %cst_29 = arith.constant dense<0.000000e+00> : vector<8x256xf32>
    %69 = tpu.matmul %66, %68, %cst_29 {dimension_numbers = #tpu.dot_dimension_numbers<[1], [0], [0], [1], [0, 0, 1, 1], [], []>} : vector<8x512xbf16>, vector<512x256xbf16>, vector<8x256xf32> -> vector<8x256xf32>
    %70 = vector.extract_strided_slice %4 {offsets = [0, 0], sizes = [1, 256], strides = [1, 1]} : vector<5x256xf32> to vector<1x256xf32>
    %71 = vector.broadcast %70 : vector<1x256xf32> to vector<8x256xf32>
    %72 = arith.addf %69, %71 : vector<8x256xf32>
    %73 = vector.extract_strided_slice %4 {offsets = [1, 0], sizes = [1, 256], strides = [1, 1]} : vector<5x256xf32> to vector<1x256xf32>
    %74 = vector.extract_strided_slice %4 {offsets = [2, 0], sizes = [1, 256], strides = [1, 1]} : vector<5x256xf32> to vector<1x256xf32>
    %cst_30 = arith.constant dense<0.000000e+00> : vector<8xf32>
    %75 = vector.multi_reduction <add>, %72, %cst_30 [1] : vector<8x256xf32> to vector<8xf32>
    %76 = vector.shape_cast %75 : vector<8xf32> to vector<8x1xf32>
    %cst_31 = arith.constant 3.906250e-03 : f32
    %77 = vector.broadcast %cst_31 : f32 to vector<8x1xf32>
    %78 = arith.mulf %76, %77 : vector<8x1xf32>
    %79 = vector.broadcast %78 : vector<8x1xf32> to vector<8x256xf32>
    %80 = arith.subf %72, %79 : vector<8x256xf32>
    %81 = arith.mulf %80, %80 : vector<8x256xf32>
    %cst_32 = arith.constant dense<0.000000e+00> : vector<8xf32>
    %82 = vector.multi_reduction <add>, %81, %cst_32 [1] : vector<8x256xf32> to vector<8xf32>
    %83 = vector.shape_cast %82 : vector<8xf32> to vector<8x1xf32>
    %cst_33 = arith.constant 3.906250e-03 : f32
    %84 = vector.broadcast %cst_33 : f32 to vector<8x1xf32>
    %85 = arith.mulf %83, %84 : vector<8x1xf32>
    %cst_34 = arith.constant 9.99999974E-6 : f32
    %86 = vector.broadcast %cst_34 : f32 to vector<8x1xf32>
    %87 = arith.addf %85, %86 : vector<8x1xf32>
    %88 = math.rsqrt %87 : vector<8x1xf32>
    %89 = vector.broadcast %88 : vector<8x1xf32> to vector<8x256xf32>
    %90 = arith.mulf %80, %89 : vector<8x256xf32>
    %91 = vector.broadcast %73 : vector<1x256xf32> to vector<8x256xf32>
    %92 = arith.mulf %90, %91 : vector<8x256xf32>
    %93 = vector.broadcast %74 : vector<1x256xf32> to vector<8x256xf32>
    %94 = arith.addf %92, %93 : vector<8x256xf32>
    %cst_35 = arith.constant 0.000000e+00 : f32
    %95 = vector.broadcast %cst_35 : f32 to vector<8x256xf32>
    %96 = arith.maximumf %94, %95 : vector<8x256xf32>
    %97 = vector.extract_strided_slice %4 {offsets = [3, 0], sizes = [1, 256], strides = [1, 1]} : vector<5x256xf32> to vector<1x256xf32>
    %cst_36 = arith.constant dense<0.000000e+00> : vector<1x8xf32>
    %98 = tpu.matmul %97, %96, %cst_36 {dimension_numbers = #tpu.dot_dimension_numbers<[1], [1], [0], [0], [0, 0, 1, 0], [], []>} : vector<1x256xf32>, vector<8x256xf32>, vector<1x8xf32> -> vector<1x8xf32>
    %99 = vector.extract_strided_slice %4 {offsets = [4, 0], sizes = [1, 1], strides = [1, 1]} : vector<5x256xf32> to vector<1x1xf32>
    %100 = vector.broadcast %99 : vector<1x1xf32> to vector<1x8xf32>
    %101 = arith.addf %98, %100 : vector<1x8xf32>
    %102 = vector.shape_cast %101 : vector<1x8xf32> to vector<1x1x8xf32>
    %c0_37 = arith.constant 0 : index
    %c0_38 = arith.constant 0 : index
    %c0_39 = arith.constant 0 : index
    %103 = vector.load %arg8[%c0_37, %c0_38, %c0_39] : memref<1x1x8xf32, #tpu.memory_space<vmem>>, vector<1x1x8xf32>
    tpu.vector_store %arg8[%c0_37, %c0_38, %c0_39], %102 {strides = array<i32>} : memref<1x1x8xf32, #tpu.memory_space<vmem>>, vector<1x1x8xf32>,
    return
  }
  func.func @transform_0(%arg0: i32, %arg1: i32) -> (i32, i32) {
    %c0_i32 = arith.constant 0 : i32
    %c0_i32_0 = arith.constant 0 : i32
    return %arg1, %c0_i32 : i32, i32
  }
  func.func @transform_1(%arg0: i32, %arg1: i32) -> (i32, i32, i32) {
    %c0_i32 = arith.constant 0 : i32
    %c0_i32_0 = arith.constant 0 : i32
    %c0_i32_1 = arith.constant 0 : i32
    return %arg0, %c0_i32, %c0_i32_0 : i32, i32, i32
  }
  func.func @transform_2(%arg0: i32, %arg1: i32) -> (i32, i32, i32) {
    %c0_i32 = arith.constant 0 : i32
    %c0_i32_0 = arith.constant 0 : i32
    %c0_i32_1 = arith.constant 0 : i32
    return %arg0, %c0_i32, %c0_i32_0 : i32, i32, i32
  }
  func.func @transform_3(%arg0: i32, %arg1: i32) -> (i32, i32, i32) {
    %c0_i32 = arith.constant 0 : i32
    %c0_i32_0 = arith.constant 0 : i32
    %c0_i32_1 = arith.constant 0 : i32
    return %arg0, %c0_i32, %c0_i32_0 : i32, i32, i32
  }
  func.func @transform_4(%arg0: i32, %arg1: i32) -> (i32, i32, i32) {
    %c0_i32 = arith.constant 0 : i32
    %c0_i32_0 = arith.constant 0 : i32
    %c0_i32_1 = arith.constant 0 : i32
    return %arg0, %c0_i32, %c0_i32_0 : i32, i32, i32
  }
  func.func @transform_5(%arg0: i32, %arg1: i32) -> (i32, i32, i32) {
    %c0_i32 = arith.constant 0 : i32
    %c0_i32_0 = arith.constant 0 : i32
    %c0_i32_1 = arith.constant 0 : i32
    return %arg0, %c0_i32, %c0_i32_0 : i32, i32, i32
  }
  func.func @transform_6(%arg0: i32, %arg1: i32) -> (i32, i32, i32) {
    %c0_i32 = arith.constant 0 : i32
    %c0_i32_0 = arith.constant 0 : i32
    return %arg0, %c0_i32, %arg1 : i32, i32, i32
  }
}

</mosaic_0001>

<bundles_post_ra>
// kernel: critic_forward.1
= control target key start
LH: loop header
LB: loop body
LE: loop exit
PB: predicated region body
PF: predicated region fallthrough
CT: control target
= control target key end

     0   :  { %s3613_s0 = inlined_call_operand.vmem [shape: bf16[8,16], index: 0, kind: input, shape index: {}]   ;;  %s3614_s1 = inlined_call_operand.vmem [shape: bf16[2,16,512], index: 1, kind: input, shape index: {}]   ;;  %s3615_s2 = inlined_call_operand.hbm [shape: bf16[2,512,512], index: 2, kind: input, shape index: {}]   ;;  %s3616_s3 = inlined_call_operand.hbm [shape: bf16[2,512,256], index: 3, kind: input, shape index: {}]   ;;  %s3617_s4 = inlined_call_operand.vmem [shape: f32[2,6,512], index: 4, kind: input, shape index: {}]   ;;  %s3618_s5 = inlined_call_operand.vmem [shape: f32[2,5,256], index: 5, kind: input, shape index: {}]   ;;  %s3619_s6 = inlined_call_operand.vmem [shape: f32[2,1,8], index: 6, kind: output, shape index: {}]  }
   0x1   :  { %3620 = sst [smem:[#allocation8_spill]] %s3615_s2 }
   0x2   :  { %11 = vsyncpa [#allocation3], 0 }
   0x3   :  { %13 = vsyncpa [#allocation3 + $0x1], 0 }
   0x4   :  { %14 = vsyncpa [#allocation5], 0 }
   0x5   :  { %16 = vsyncpa [#allocation5 + $0x1], 0  ;;  %s3130_s21 = smov 0   ;;  %s3132_s22 = smov 0  }
   0x6   :  { %s3134_s23 = smov 0   ;;  %s3136_s24 = smov 0  }
   0x7   :  { %s3138_s25 = smov 0   ;;  %s3140_s26 = smov 0  }
   0x8 LB: > { %s2381_s27 = sadd.s32 4294967295, %s3086_s26   ;;  %s34_s28 = sadd.s32 1, %s3082_s25  ;;  %s3086_s26 = sphi %s3140_s26, %s22_s26   ;;  %s3082_s25 = sphi %s3138_s25, %s3630_s25   ;;  %s3078_s24 = sphi %s3136_s24, %s3629_s24   ;;  %s3074_s23 = sphi %s3134_s23, %s3628_s23   ;;  %s3070_s22 = sphi %s3132_s22, %s3627_s22   ;;  %s3066_s21 = sphi %s3130_s21, %s3626_s21  }
   0x9   : > { %p36_p0 = scmp.ge.s32.totalorder %s34_s28, 2  ;;  %s93_s29 = sadd.s32 1, %s3074_s23 }
   0xa   : > { %p100_p1 = scmp.ne.s32.totalorder %s3074_s23, %s3070_s22  ;;  %p101_p2 = scmp.eq.s32.totalorder %s3086_s26, 0 }
   0xb   : > { %s3632_s28 = smov (%p36_p0, %s34_s28), 0  ;;  %p106_p4 = scmp.ne.s32.totalorder %s3070_s22, %s3066_s21 }
   0xc   : > { %p3166_p3 = por %p101_p2, %p100_p1  ;;  %s90_s7 = ssub.s32 %s3082_s25, %s3632_s28 }
   0xd   : > { %p107_p5 = scmp.eq.s32.totalorder %s2381_s27, 0  ;;  %p91_p6 = scmp.eq.s32.totalorder %s90_s7, 0 }
   0xe   : > { %p2617_p8 = scmp.lt.s32.totalorder %s3086_s26, 2  ;;  %s3182_s10 = sand.u32 1, %s3074_s23  }
   0xf   : > { %p3173_p7 = por %p107_p5, %p106_p4  ;;  %s2601_s11 = sshll.u32 %s3082_s25, 14 }
  0x10   : > { %s3179_s9 = scalar_select %p91_p6, %s3074_s23, %s93_s29  }
  0x11   : > { %s2386_s12 = sshll.u32 %s3182_s10, 10  ;;  %s3623_s2 = sld [smem:[#allocation8_spill]] }
  0x12   : > { %s255_s16 = scalar_lea.vmem [#allocation2], %s2386_s12  ;;  %p3191_p9 = pnand %p2617_p8, %p3166_p3 }
  0x13   : > { %s262_s17 = sshll.u32 %s255_s16, 4  ;;  %s252_s19 = scalar_lea.sflag [#allocation3], %s3182_s10  ;;  %s263_s17 = int_to_ptr.vmem [resolvable:$true] %s262_s17 }
  0x14   : > { %p2978_p10 = pneg %p3191_p9  ;;  %s2989_s20 = scalar_lea.vmem %s263_s17, 16384 }
  0x15   : > { %p2990_p11 = scmp.ne.s32.totalorder %s263_s17, %s2989_s20  ;;  %s3088_s21 = smov [#allocation2]  }
  0x16   : > { %s2994_s27 = sshll.u32 %s3088_s21, 4  ;;  %s2995_s27 = int_to_ptr.vmem [resolvable:$false] %s2994_s27 }
  0x17   : > { %s261_s15 = scalar_lea.hbm %s3623_s2, %s2601_s11  ;;  %p2992_p12 = pnand %p2990_p11, %p2978_p10 }
  0x18   : > { %s2996_s29 = scalar_lea.vmem %s2995_s27, 32768  ;;  %p2997_p0 = scmp.lt.s32.totalorder %s263_s17, %s2995_s27 }
  0x19   : > { %p2993_p13 = pneg %p2992_p12  ;;  %p2998_p1 = scmp.lt.s32.totalorder %s2996_s29, %s2989_s20 }
  0x1b   : > { %p2999_p2 = por %p2998_p1, %p2997_p0 }
  0x1d   : > { %p3000_p3 = pnand %p2999_p2, %p2993_p13 }
  0x1f   : > { %3003 = shalt.err (!%p3000_p3)
}
  0x20   : > { %s3089_s30 = smov 256   ;;  %s3090_s7 = smov 16  }
  0x21   : > { %2613 = dma.hbm_to_vmem [thread:$0]  (!%p3191_p9), %s261_s15, 16384, %s263_s17, %s252_s19, %s3089_s30, %s3089_s30, %s3090_s7  }
  0x22   : > { %p2392_p4 = scmp.ge.s32.totalorder %s3086_s26, 1  ;;  %p307_p5 = scmp.lt.s32.totalorder %s3086_s26, 3 }
  0x23   : > { %s2389_s11 = sshll.u32 %s3182_s10, 9  ;;  %s2602_s13 = sshll.u32 %s3082_s25, 13 }
  0x24   : > { %p3206_p6 = pnand %p2392_p4, %p307_p5  ;;  %s276_s14 = scalar_lea.vmem [#allocation4], %s2389_s11 }
  0x25   : > { %s283_s16 = sshll.u32 %s276_s14, 4  ;;  %s282_s27 = scalar_lea.hbm %s3616_s3, %s2602_s13  ;;  %s284_s16 = int_to_ptr.vmem [resolvable:$true] %s283_s16 }
  0x26   : > { %s273_s29 = scalar_lea.sflag [#allocation5], %s3182_s10  ;;  %s3017_s2 = scalar_lea.vmem %s284_s16, 8192 }
  0x27   : > { %p3018_p8 = scmp.ne.s32.totalorder %s284_s16, %s3017_s2  ;;  %s3091_s15 = smov [#allocation4]  }
  0x28   : > { %s3022_s17 = sshll.u32 %s3091_s15, 4  ;;  %s3023_s17 = int_to_ptr.vmem [resolvable:$false] %s3022_s17 }
  0x29   : > { %p3020_p11 = pnand %p3018_p8, %p2978_p10  ;;  %s3024_s19 = scalar_lea.vmem %s3023_s17, 16384 }
  0x2a   : > { %p3025_p13 = scmp.lt.s32.totalorder %s284_s16, %s3023_s17  ;;  %p3026_p0 = scmp.lt.s32.totalorder %s3024_s19, %s3017_s2 }
  0x2b   : > { %p3021_p12 = pneg %p3020_p11 }
  0x2c   : > { %p3027_p1 = por %p3026_p0, %p3025_p13 }
  0x2e   : > { %p3028_p2 = pnand %p3027_p1, %p3021_p12 }
  0x30   : > { %3031 = shalt.err (!%p3028_p2)
}
  0x31   : > { %s3092_s30 = smov 128   ;;  %s3093_s7 = smov 8  }
  0x32   : > { %2616 = dma.hbm_to_vmem [thread:$0]  (!%p3191_p9), %s282_s27, 8192, %s284_s16, %s273_s29, %s3092_s30, %s3092_s30, %s3093_s7  }
  0x33   : > { %311 = sbr.rel (%p3206_p6) target bundleno = 1883 (0x75b), region = 44  ;;  %s313_s10 = sand.u32 (!%p3206_p6), 1, %s3070_s22  }
  0x34   : > { %s2393_s11 = sshll.u32 (!%p3206_p6), %s313_s10, 10  ;;  %s314_s13 = scalar_lea.sflag (!%p3206_p6), [#allocation3], %s313_s10 }
  0x35   : > { %s3223_s14 = scalar_lea.vmem (!%p3206_p6), [#allocation2], %s2393_s11 }
  0x38   : > { %3057 = dma.done.wait (%p3173_p7), %s314_s13, 16384  }
  0x39   : > { %3059 = vsyncadd (%p3173_p7), %s314_s13, 4294950912  ;;  %s2394_s2 = sshll.u32 %s313_s10, 9  ;;  %s323_s20 = scalar_lea.sflag [#allocation5], %s313_s10 }
  0x3a   : > { %s3229_s18 = scalar_lea.vmem [#allocation4], %s2394_s2 }
  0x3b   : > { %3061 = dma.done.wait (%p3173_p7), %s323_s20, 8192  }
  0x3c   : > { %3063 = vsyncadd (%p3173_p7), %s323_s20, 4294959104  ;;  %p384_p9 = scmp.lt.s32.totalorder %s3078_s24, 1  ;;  %v3094_v0 = vmov 0   ;;  %v406_v5 = vld [vmem:[%s3613_s0] sm:$0xf]  ;;  %vm453_vm0 = vcmask 130048   ;;  %v417_v6 = vlaneseq }
  0x3d   : > { %489 = vmatprep.mubr.bf16.mxu0 %v3094_v0  ;;  %530 = vmatprep.mubr.bf16.mxu1 %v3094_v0  ;;  %v2678_v32 = vld [vmem:[%s3223_s14 + $0xe0] ss:$16 sps:$4 sm:$0xff]   ;;  %v2680_v33 = vld [vmem:[%s3223_s14 + $0xe4] ss:$16 sps:$4 sm:$0xff]   ;;  %vm2228_vm1 = vcmask 57344  }
  0x3e   : > { %s3634_s24 = smov (!%p384_p9, %s3078_s24), 1  ;;  %2671 = vset.pattern.permute.xlu0 %v3094_v0  ;;  %v3246_v7 = vshrl.u32 %v417_v6, 7  ;;  %v2681_v34 = vld [vmem:[%s3223_s14 + $0x2e0] ss:$16 sps:$4 sm:$0xff]   ;;  %v2683_v35 = vld [vmem:[%s3223_s14 + $0x2e4] ss:$16 sps:$4 sm:$0xff]  }
  0x3f   : > { %s2603_s12 = sshll.u32 %s3634_s24, 5  ;;  %v2686_v36 = vld [vmem:[%s3223_s14 + $0xc4] ss:$16 sps:$4 sm:$0xff]   ;;  %v2684_v38 = vld [vmem:[%s3223_s14 + $0xc0] ss:$16 sps:$4 sm:$0xff]   ;;  %s2605_s30 = sshll.u32 %s3634_s24, 4 }
  0x40   : > { %s388_s27 = scalar_lea.vmem %s3614_s1, %s2603_s12  ;;  %s3251_s19 = scalar_lea.vmem %s3617_s4, %s2603_s12  ;;  %v3254_v8 = vsub.s32 0, %v3246_v7  ;;  %v2689_v37 = vld [vmem:[%s3223_s14 + $0x2c4] ss:$16 sps:$4 sm:$0xff]   ;;  %v2687_v39 = vld [vmem:[%s3223_s14 + $0x2c0] ss:$16 sps:$4 sm:$0xff]  }
  0x41   : > { %v2672_v1 = vld [vmem:[%s388_s27 + $0x4] ss:$16 sps:$4 sm:$0xff]   ;;  %v2674_v2 = vld [vmem:[%s388_s27 + $0xc] ss:$16 sps:$4 sm:$0xff]   ;;  %v2676_v3 = vld [vmem:[%s388_s27] ss:$16 sps:$4 sm:$0xff]   ;;  %s398_s11 = scalar_lea.vmem %s3618_s5, %s2605_s30  ;;  %s404_s2 = scalar_lea.vmem %s3619_s6, %s3634_s24 }
  0x42   : > { %v2677_v4 = vld [vmem:[%s388_s27 + $0x8] ss:$16 sps:$4 sm:$0xff]   ;;  %471 = vmatprep.subr.bf16.mxu0 %v2672_v1  ;;  %512 = vmatprep.subr.bf16.mxu1 %v2674_v2  ;;  %v3257_v9 = vld [vmem:[%s3251_s19] sm:$0x3f]  ;;  %v3263_v11 = vld [vmem:[%s3251_s19 + $0x10] sm:$0x3f] }
  0x43   : > { %472 = vmatpush1.bf16.msra.mxu0 %v2676_v3  ;;  %513 = vmatpush1.bf16.msra.mxu1 %v2677_v4  ;;  %v3260_v10 = vld [vmem:[%s3251_s19 + $0x8] sm:$0x3f]  ;;  %v420_v12 = vrot.slane %v3257_v9, %v3254_v8  ;;  %v428_v13 = vrot.slane %v3263_v11, %v3254_v8  ;;  %v3272_v15 = vld [vmem:[%s3251_s19 + $0x18] sm:$0x3f]  ;;  %v2692_v40 = vld [vmem:[%s3223_s14 + $0xa4] ss:$16 sps:$4 sm:$0xff]  }
  0x44   : > { %v424_v14 = vrot.slane %v3260_v10, %v3254_v8  ;;  %v432_v22 = vrot.slane %v3272_v15, %v3254_v8  ;;  %1397 = vmatprep.subr.bf16.mxu0 %v2680_v33  ;;  %1438 = vmatprep.subr.bf16.mxu1 %v2683_v35  ;;  %v2695_v41 = vld [vmem:[%s3223_s14 + $0x2a4] ss:$16 sps:$4 sm:$0xff]   ;;  %v2690_v42 = vld [vmem:[%s3223_s14 + $0xa0] ss:$16 sps:$4 sm:$0xff]  }
  0x45   : > { %v2693_v43 = vld [vmem:[%s3223_s14 + $0x2a0] ss:$16 sps:$4 sm:$0xff]   ;;  %v2698_v44 = vld [vmem:[%s3223_s14 + $0x84] ss:$16 sps:$4 sm:$0xff]  }
  0x46   : > { %2405 = vmatmul.mubr.msk.bf16.vlgmr.msra.gmra.mxu0 %vm453_vm0, %v406_v5  ;;  %2406 = vmatmul.mubr.msk.bf16.vlgmr.msra.gmra.mxu1 %vm453_vm0, %v406_v5  ;;  %v2701_v45 = vld [vmem:[%s3223_s14 + $0x284] ss:$16 sps:$4 sm:$0xff]   ;;  %v2696_v46 = vld [vmem:[%s3223_s14 + $0x80] ss:$16 sps:$4 sm:$0xff]  }
  0x47   : > { %1398 = vmatpush1.bf16.msra.mxu0 %v2678_v32  ;;  %1439 = vmatpush1.bf16.msra.mxu1 %v2681_v34  ;;  %v2699_v47 = vld [vmem:[%s3223_s14 + $0x280] ss:$16 sps:$4 sm:$0xff]   ;;  %v2704_v48 = vld [vmem:[%s3223_s14 + $0x64] ss:$16 sps:$4 sm:$0xff]  }
  0x48   : > { %1399 = vmatprep.subr.bf16.mxu0 %v2686_v36  ;;  %1440 = vmatprep.subr.bf16.mxu1 %v2689_v37  ;;  %v2707_v49 = vld [vmem:[%s3223_s14 + $0x264] ss:$16 sps:$4 sm:$0xff]   ;;  %v2702_v50 = vld [vmem:[%s3223_s14 + $0x60] ss:$16 sps:$4 sm:$0xff]  }
  0x49   : > { %v2705_v51 = vld [vmem:[%s3223_s14 + $0x260] ss:$16 sps:$4 sm:$0xff]   ;;  %v2710_v52 = vld [vmem:[%s3223_s14 + $0x44] ss:$16 sps:$4 sm:$0xff]  }
  0x4a   : > { %v2713_v53 = vld [vmem:[%s3223_s14 + $0x244] ss:$16 sps:$4 sm:$0xff]   ;;  %v2708_v54 = vld [vmem:[%s3223_s14 + $0x40] ss:$16 sps:$4 sm:$0xff]  }
  0x4b   : > { %1400 = vmatpush1.bf16.msra.mxu0 %v2684_v38  ;;  %1441 = vmatpush1.bf16.msra.mxu1 %v2687_v39  ;;  %v2711_v55 = vld [vmem:[%s3223_s14 + $0x240] ss:$16 sps:$4 sm:$0xff]   ;;  %v2716_v56 = vld [vmem:[%s3223_s14 + $0x24] ss:$16 sps:$4 sm:$0xff]  }
  0x4c   : > { %1401 = vmatprep.subr.bf16.mxu0 %v2692_v40  ;;  %1442 = vmatprep.subr.bf16.mxu1 %v2695_v41  ;;  %v2719_v57 = vld [vmem:[%s3223_s14 + $0x224] ss:$16 sps:$4 sm:$0xff]   ;;  %v2714_v58 = vld [vmem:[%s3223_s14 + $0x20] ss:$16 sps:$4 sm:$0xff]  }
  0x4d   : > { %v2717_v59 = vld [vmem:[%s3223_s14 + $0x220] ss:$16 sps:$4 sm:$0xff]   ;;  %v2722_v60 = vld [vmem:[%s3223_s14 + $0x4] ss:$16 sps:$4 sm:$0xff]  }
  0x4e   : > { %v2725_v61 = vld [vmem:[%s3223_s14 + $0x204] ss:$16 sps:$4 sm:$0xff]   ;;  %v2720_v62 = vld [vmem:[%s3223_s14] ss:$16 sps:$4 sm:$0xff]  }
  0x4f   : > { %1402 = vmatpush1.bf16.msra.mxu0 %v2690_v42  ;;  %1443 = vmatpush1.bf16.msra.mxu1 %v2693_v43  ;;  %v2723_v63 = vld [vmem:[%s3223_s14 + $0x200] ss:$16 sps:$4 sm:$0xff]   ;;  %v2728_v0 = vld [vmem:[%s3223_s14 + $0x1e4] ss:$16 sps:$4 sm:$0xff]  }
  0x50   : > { %1403 = vmatprep.subr.bf16.mxu0 %v2698_v44  ;;  %1444 = vmatprep.subr.bf16.mxu1 %v2701_v45  ;;  %v2731_v1 = vld [vmem:[%s3223_s14 + $0x3e4] ss:$16 sps:$4 sm:$0xff]   ;;  %v2726_v2 = vld [vmem:[%s3223_s14 + $0x1e0] ss:$16 sps:$4 sm:$0xff]  }
  0x51   : > { %v2729_v3 = vld [vmem:[%s3223_s14 + $0x3e0] ss:$16 sps:$4 sm:$0xff]   ;;  %v2749_v32 = vld [vmem:[%s3223_s14 + $0x384] ss:$16 sps:$4 sm:$0xff]  }
  0x52   : > { %v2744_v33 = vld [vmem:[%s3223_s14 + $0x180] ss:$16 sps:$4 sm:$0xff]   ;;  %v2752_v35 = vld [vmem:[%s3223_s14 + $0x164] ss:$16 sps:$4 sm:$0xff]  }
  0x53   : > { %1404 = vmatpush1.bf16.msra.mxu0 %v2696_v46  ;;  %1445 = vmatpush1.bf16.msra.mxu1 %v2699_v47  ;;  %v2747_v34 = vld [vmem:[%s3223_s14 + $0x380] ss:$16 sps:$4 sm:$0xff]   ;;  %v2755_v36 = vld [vmem:[%s3223_s14 + $0x364] ss:$16 sps:$4 sm:$0xff]  }
  0x54   : > { %1405 = vmatprep.subr.bf16.mxu0 %v2704_v48  ;;  %1446 = vmatprep.subr.bf16.mxu1 %v2707_v49  ;;  %v2750_v37 = vld [vmem:[%s3223_s14 + $0x160] ss:$16 sps:$4 sm:$0xff]   ;;  %v2758_v39 = vld [vmem:[%s3223_s14 + $0x144] ss:$16 sps:$4 sm:$0xff]  }
  0x55   : > { %v2753_v38 = vld [vmem:[%s3223_s14 + $0x360] ss:$16 sps:$4 sm:$0xff]   ;;  %v2761_v40 = vld [vmem:[%s3223_s14 + $0x344] ss:$16 sps:$4 sm:$0xff]  }
  0x56   : > { %v2756_v41 = vld [vmem:[%s3223_s14 + $0x140] ss:$16 sps:$4 sm:$0xff]   ;;  %v2764_v43 = vld [vmem:[%s3223_s14 + $0x124] ss:$16 sps:$4 sm:$0xff]  }
  0x57   : > { %1406 = vmatpush1.bf16.msra.mxu0 %v2702_v50  ;;  %1447 = vmatpush1.bf16.msra.mxu1 %v2705_v51  ;;  %v2759_v42 = vld [vmem:[%s3223_s14 + $0x340] ss:$16 sps:$4 sm:$0xff]   ;;  %v2767_v44 = vld [vmem:[%s3223_s14 + $0x324] ss:$16 sps:$4 sm:$0xff]   ;;  %v2776_v51 = vld [vmem:[%s3223_s14 + $0xec] ss:$16 sps:$4 sm:$0xff]  }
  0x58   : > { %1407 = vmatprep.subr.bf16.mxu0 %v2710_v52  ;;  %1448 = vmatprep.subr.bf16.mxu1 %v2713_v53  ;;  %v2762_v45 = vld [vmem:[%s3223_s14 + $0x120] ss:$16 sps:$4 sm:$0xff]   ;;  %v2770_v47 = vld [vmem:[%s3223_s14 + $0x104] ss:$16 sps:$4 sm:$0xff]   ;;  %v2779_v52 = vld [vmem:[%s3223_s14 + $0x2ec] ss:$16 sps:$4 sm:$0xff]  }
  0x59   : > { %v2765_v46 = vld [vmem:[%s3223_s14 + $0x320] ss:$16 sps:$4 sm:$0xff]   ;;  %v2773_v48 = vld [vmem:[%s3223_s14 + $0x304] ss:$16 sps:$4 sm:$0xff]  }
  0x5a   : > { %v2768_v49 = vld [vmem:[%s3223_s14 + $0x100] ss:$16 sps:$4 sm:$0xff]  }
  0x5b   : > { %1408 = vmatpush1.bf16.msra.mxu0 %v2708_v54  ;;  %1449 = vmatpush1.bf16.msra.mxu1 %v2711_v55  ;;  %v2771_v50 = vld [vmem:[%s3223_s14 + $0x300] ss:$16 sps:$4 sm:$0xff]  }
  0x5c   : > { %1409 = vmatprep.subr.bf16.mxu0 %v2716_v56  ;;  %1450 = vmatprep.subr.bf16.mxu1 %v2719_v57  ;;  %v3375_v56 = vsub.s32 1, %v3246_v7  ;;  %v3378_v57 = vsub.s32 2, %v3246_v7 }
  0x5f   : > { %1410 = vmatpush1.bf16.msra.mxu0 %v2714_v58  ;;  %1451 = vmatpush1.bf16.msra.mxu1 %v2717_v59  ;;  %v572_v58 = vrot.slane %v3260_v10, %v3375_v56  ;;  %v580_v59 = vrot.slane %v3272_v15, %v3375_v56 }
  0x60   : > { %1411 = vmatprep.subr.bf16.mxu0 %v2722_v60  ;;  %1452 = vmatprep.subr.bf16.mxu1 %v2725_v61  ;;  %v568_v60 = vrot.slane %v3257_v9, %v3375_v56  ;;  %v576_v61 = vrot.slane %v3263_v11, %v3375_v56 }
  0x63   : > { %1412 = vmatpush1.bf16.msra.mxu0 %v2720_v62  ;;  %1453 = vmatpush1.bf16.msra.mxu1 %v2723_v63  ;;  %v592_v63 = vrot.slane %v3260_v10, %v3378_v57 }
  0x64   : > { %1413 = vmatprep.subr.bf16.mxu0 %v2728_v0  ;;  %1454 = vmatprep.subr.bf16.mxu1 %v2731_v1  ;;  %v600_v0 = vrot.slane %v3272_v15, %v3378_v57  ;;  %v588_v1 = vrot.slane %v3257_v9, %v3378_v57 }
  0x67   : > { %1414 = vmatpush2.bf16.msra.mxu0 %v2726_v2  ;;  %1455 = vmatpush2.bf16.msra.mxu1 %v2729_v3  ;;  %v596_v2 = vrot.slane %v3263_v11, %v3378_v57 }
 0x106   : > { %v491_v16 = vpop.f32.mrf.mxu0  ;;  %v532_v17 = vpop.f32.mrf.mxu1 }
 0x107   : > { %v3274_v19 = vadd.f32 %v491_v16, %v420_v12  ;;  %v3276_v20 = vadd.f32 %v532_v17, %v428_v13 }
 0x108   : > { %v493_v18 = vpop.f32.mrf.mxu0  ;;  %v534_v23 = vpop.f32.mrf.mxu1 }
 0x109   : > { %v3278_v21 = vadd.f32 %v493_v18, %v424_v14  ;;  %v3284_v28 = vadd.f32 %v534_v23, %v432_v22  ;;  %v2734_v23 = vld [vmem:[%s3223_s14 + $0x1c4] ss:$16 sps:$4 sm:$0xff]  }
 0x10a   : > { %v495_v24 = vpop.f32.mrf.mxu0  ;;  %v536_v26 = vpop.f32.mrf.mxu1  ;;  %1415 = vmatprep.subr.bf16.mxu0 %v2734_v23 }
 0x10b   : > { %v539_v25 = vadd.f32 %v3278_v21, %v3274_v19  ;;  %v2737_v24 = vld [vmem:[%s3223_s14 + $0x3c4] ss:$16 sps:$4 sm:$0xff]   ;;  %v2735_v26 = vld [vmem:[%s3223_s14 + $0x3c0] ss:$16 sps:$4 sm:$0xff]  }
 0x10c   : > { %v496_v27 = vpop.f32.mrf.mxu0  ;;  %v537_v29 = vpop.f32.mrf.mxu1  ;;  %1456 = vmatprep.subr.bf16.mxu1 %v2737_v24 }
 0x10d   : > { %v540_v30 = vadd.f32 %v539_v25, %v3276_v20  ;;  %v2732_v25 = vld [vmem:[%s3223_s14 + $0x1c0] ss:$16 sps:$4 sm:$0xff]   ;;  %1457 = vmatpush2.bf16.msra.mxu1 %v2735_v26  ;;  %v2740_v27 = vld [vmem:[%s3223_s14 + $0x1a4] ss:$16 sps:$4 sm:$0xff]  }
 0x10e   : > { %1416 = vmatpush2.bf16.msra.mxu0 %v2732_v25  ;;  %v2738_v29 = vld [vmem:[%s3223_s14 + $0x1a0] ss:$16 sps:$4 sm:$0xff]  }
 0x10f   : > { %v541_v31 = vadd.f32 %v540_v30, %v3284_v28  ;;  %v2741_v30 = vld [vmem:[%s3223_s14 + $0x3a0] ss:$16 sps:$4 sm:$0xff]   ;;  %1417 = vmatprep.subr.bf16.mxu0 %v2740_v27 }
 0x111   : > { %542 = vadd.xlane.f32.xlu0 %v541_v31  ;;  %v2746_v31 = vld [vmem:[%s3223_s14 + $0x184] ss:$16 sps:$4 sm:$0xff]  }
 0x112   : > { %1418 = vmatpush2.bf16.msra.mxu0 %v2738_v29 }
 0x113   : > { %1419 = vmatprep.subr.bf16.mxu0 %v2746_v31  ;;  %v2782_v31 = vld [vmem:[%s3223_s14 + $0xcc] ss:$16 sps:$4 sm:$0xff]  }
 0x116   : > { %1420 = vmatpush2.bf16.msra.mxu0 %v2744_v33  ;;  %v2780_v33 = vld [vmem:[%s3223_s14 + $0xc8] ss:$16 sps:$4 sm:$0xff]  }
 0x117   : > { %1421 = vmatprep.subr.bf16.mxu0 %v2752_v35  ;;  %v2788_v35 = vld [vmem:[%s3223_s14 + $0xac] ss:$16 sps:$4 sm:$0xff]  }
 0x11a   : > { %1422 = vmatpush2.bf16.msra.mxu0 %v2750_v37  ;;  %v2786_v37 = vld [vmem:[%s3223_s14 + $0xa8] ss:$16 sps:$4 sm:$0xff]  }
 0x11b   : > { %1423 = vmatprep.subr.bf16.mxu0 %v2758_v39  ;;  %v2794_v39 = vld [vmem:[%s3223_s14 + $0x8c] ss:$16 sps:$4 sm:$0xff]  }
 0x11e   : > { %1424 = vmatpush2.bf16.msra.mxu0 %v2756_v41  ;;  %v2792_v41 = vld [vmem:[%s3223_s14 + $0x88] ss:$16 sps:$4 sm:$0xff]  }
 0x11f   : > { %1425 = vmatprep.subr.bf16.mxu0 %v2764_v43  ;;  %v2800_v43 = vld [vmem:[%s3223_s14 + $0x6c] ss:$16 sps:$4 sm:$0xff]  }
 0x122   : > { %1426 = vmatpush2.bf16.msra.mxu0 %v2762_v45  ;;  %v2798_v45 = vld [vmem:[%s3223_s14 + $0x68] ss:$16 sps:$4 sm:$0xff]  }
 0x123   : > { %1427 = vmatprep.subr.bf16.mxu0 %v2770_v47  ;;  %v2806_v47 = vld [vmem:[%s3223_s14 + $0x4c] ss:$16 sps:$4 sm:$0xff]  }
 0x126   : > { %1428 = vmatpush2.bf16.msra.mxu0 %v2768_v49  ;;  %v2804_v49 = vld [vmem:[%s3223_s14 + $0x48] ss:$16 sps:$4 sm:$0xff]  }
 0x127   : > { %1479 = vmatprep.subr.bf16.mxu0 %v2776_v51  ;;  %v2812_v51 = vld [vmem:[%s3223_s14 + $0x2c] ss:$16 sps:$4 sm:$0xff]  }
 0x19a   : > { %v543_v4 = vpop.xlane.xlu0 %542 }
 0x19b   : > { %v544_v5 = vmul.f32 0.001953125, %v543_v4 }
 0x19d   : > { %v3325_v6 = vsub.f32 %v3274_v19, %v544_v5  ;;  %v3328_v12 = vsub.f32 %v3278_v21, %v544_v5  ;;  %v3331_v13 = vsub.f32 %v3276_v20, %v544_v5  ;;  %v3334_v14 = vsub.f32 %v3284_v28, %v544_v5  ;;  %v2743_v28 = vld [vmem:[%s3223_s14 + $0x3a4] ss:$16 sps:$4 sm:$0xff]  }
 0x19e   : > { %1458 = vmatprep.subr.bf16.mxu1 %v2743_v28  ;;  %v2777_v28 = vld [vmem:[%s3223_s14 + $0x2e8] ss:$16 sps:$4 sm:$0xff]  }
 0x19f   : > { %v549_v16 = vmul.f32 %v3325_v6, %v3325_v6  ;;  %v550_v17 = vmul.f32 %v3328_v12, %v3328_v12  ;;  %v551_v18 = vmul.f32 %v3331_v13, %v3331_v13  ;;  %v552_v20 = vmul.f32 %v3334_v14, %v3334_v14  ;;  %1459 = vmatpush2.bf16.msra.mxu1 %v2741_v30 }
 0x1a0   : > { %1460 = vmatprep.subr.bf16.mxu1 %v2749_v32  ;;  %v2785_v32 = vld [vmem:[%s3223_s14 + $0x2cc] ss:$16 sps:$4 sm:$0xff]  }
 0x1a1   : > { %v553_v19 = vadd.f32 %v550_v17, %v549_v16 }
 0x1a3   : > { %v554_v21 = vadd.f32 %v553_v19, %v551_v18  ;;  %1461 = vmatpush2.bf16.msra.mxu1 %v2747_v34  ;;  %v2783_v34 = vld [vmem:[%s3223_s14 + $0x2c8] ss:$16 sps:$4 sm:$0xff]  }
 0x1a4   : > { %1462 = vmatprep.subr.bf16.mxu1 %v2755_v36  ;;  %v2791_v36 = vld [vmem:[%s3223_s14 + $0x2ac] ss:$16 sps:$4 sm:$0xff]  }
 0x1a5   : > { %v555_v22 = vadd.f32 %v554_v21, %v552_v20 }
 0x1a7   : > { %556 = vadd.xlane.f32.xlu0 %v555_v22  ;;  %1463 = vmatpush2.bf16.msra.mxu1 %v2753_v38  ;;  %v2789_v38 = vld [vmem:[%s3223_s14 + $0x2a8] ss:$16 sps:$4 sm:$0xff]  }
 0x1a8   : > { %1464 = vmatprep.subr.bf16.mxu1 %v2761_v40  ;;  %v2797_v40 = vld [vmem:[%s3223_s14 + $0x28c] ss:$16 sps:$4 sm:$0xff]  }
 0x1ab   : > { %1465 = vmatpush2.bf16.msra.mxu1 %v2759_v42  ;;  %v2795_v42 = vld [vmem:[%s3223_s14 + $0x288] ss:$16 sps:$4 sm:$0xff]  }
 0x1ac   : > { %1466 = vmatprep.subr.bf16.mxu1 %v2767_v44  ;;  %v2803_v44 = vld [vmem:[%s3223_s14 + $0x26c] ss:$16 sps:$4 sm:$0xff]  }
 0x1af   : > { %1467 = vmatpush2.bf16.msra.mxu1 %v2765_v46  ;;  %v2801_v46 = vld [vmem:[%s3223_s14 + $0x268] ss:$16 sps:$4 sm:$0xff]  }
 0x1b0   : > { %1468 = vmatprep.subr.bf16.mxu1 %v2773_v48  ;;  %v2809_v48 = vld [vmem:[%s3223_s14 + $0x24c] ss:$16 sps:$4 sm:$0xff]  }
 0x1b3   : > { %1469 = vmatpush2.bf16.msra.mxu1 %v2771_v50  ;;  %v2807_v50 = vld [vmem:[%s3223_s14 + $0x248] ss:$16 sps:$4 sm:$0xff]  }
 0x1b4   : > { %1520 = vmatprep.subr.bf16.mxu1 %v2779_v52  ;;  %v2815_v52 = vld [vmem:[%s3223_s14 + $0x22c] ss:$16 sps:$4 sm:$0xff]  }
 0x230   : > { %v557_v53 = vpop.xlane.xlu0 %556 }
 0x231   : > { %v558_v54 = vmul.f32 0.001953125, %v557_v53  ;;  %v2810_v53 = vld [vmem:[%s3223_s14 + $0x28] ss:$16 sps:$4 sm:$0xff]  }
 0x233   : > { %v559_v55 = vadd.f32 1e-05, %v558_v54  ;;  %v2813_v54 = vld [vmem:[%s3223_s14 + $0x228] ss:$16 sps:$4 sm:$0xff]  }
 0x235   : > { %2966 = vrsqrt.f32 %v559_v55  ;;  %v2818_v55 = vld [vmem:[%s3223_s14 + $0xc] ss:$16 sps:$4 sm:$0xff]  }
 0x242   : > { %v2967_v62 = vpop.eup %2966 }
 0x243   : > { %v562_v3 = vmul.f32 %v2967_v62, %v3328_v12  ;;  %v564_v4 = vmul.f32 %v2967_v62, %v3334_v14  ;;  %v561_v5 = vmul.f32 %v2967_v62, %v3325_v6  ;;  %v563_v16 = vmul.f32 %v2967_v62, %v3331_v13  ;;  %v2774_v13 = vld [vmem:[%s3223_s14 + $0xe8] ss:$16 sps:$4 sm:$0xff]   ;;  %v2827_v62 = vld [vmem:[%s3223_s14 + $0x3ec] ss:$16 sps:$4 sm:$0xff]  }
 0x245   : > { %v582_v17 = vmul.f32 %v572_v58, %v562_v3  ;;  %v584_v18 = vmul.f32 %v580_v59, %v564_v4  ;;  %v581_v19 = vmul.f32 %v568_v60, %v561_v5  ;;  %v583_v20 = vmul.f32 %v576_v61, %v563_v16  ;;  %v2821_v58 = vld [vmem:[%s3223_s14 + $0x20c] ss:$16 sps:$4 sm:$0xff]   ;;  %v2816_v59 = vld [vmem:[%s3223_s14 + $0x8] ss:$16 sps:$4 sm:$0xff]  }
 0x246   : > { %v2819_v60 = vld [vmem:[%s3223_s14 + $0x208] ss:$16 sps:$4 sm:$0xff]   ;;  %v2824_v61 = vld [vmem:[%s3223_s14 + $0x1ec] ss:$16 sps:$4 sm:$0xff]  }
 0x247   : > { %v602_v21 = vadd.f32 %v592_v63, %v582_v17  ;;  %v604_v22 = vadd.f32 %v600_v0, %v584_v18  ;;  %v601_v23 = vadd.f32 %v588_v1, %v581_v19  ;;  %v603_v24 = vadd.f32 %v596_v2, %v583_v20  ;;  %v2822_v63 = vld [vmem:[%s3223_s14 + $0x1e8] ss:$16 sps:$4 sm:$0xff]   ;;  %v2830_v1 = vld [vmem:[%s3223_s14 + $0x1cc] ss:$16 sps:$4 sm:$0xff]  }
 0x248   : > { %v2825_v0 = vld [vmem:[%s3223_s14 + $0x3e8] ss:$16 sps:$4 sm:$0xff]   ;;  %v2833_v2 = vld [vmem:[%s3223_s14 + $0x3cc] ss:$16 sps:$4 sm:$0xff]  }
 0x249   : > { %v606_v25 = vmax.f32 %v602_v21, 0.0  ;;  %v608_v12 = vmax.f32 %v604_v22, 0.0  ;;  %v605_v26 = vmax.f32 %v601_v23, 0.0  ;;  %v607_v14 = vmax.f32 %v603_v24, 0.0  ;;  %v2828_v3 = vld [vmem:[%s3223_s14 + $0x1c8] ss:$16 sps:$4 sm:$0xff]  }
 0x24a   : > { %v2831_v4 = vld [vmem:[%s3223_s14 + $0x3c8] ss:$16 sps:$4 sm:$0xff]   ;;  %v2836_v5 = vld [vmem:[%s3223_s14 + $0x1ac] ss:$16 sps:$4 sm:$0xff]  }
 0x24b   : > { %v610_v6 = vpack.c.bf16 %v606_v25, %v606_v25  ;;  %v612_v27 = vpack.c.bf16 %v608_v12, %v608_v12  ;;  %v3402_v29 = vpack.c.bf16 %v605_v26, %v605_v26  ;;  %v3404_v30 = vpack.c.bf16 %v607_v14, %v607_v14  ;;  %v2839_v16 = vld [vmem:[%s3223_s14 + $0x3ac] ss:$16 sps:$4 sm:$0xff]   ;;  %v2834_v17 = vld [vmem:[%s3223_s14 + $0x1a8] ss:$16 sps:$4 sm:$0xff]  }
 0x24c   : > { %v2837_v18 = vld [vmem:[%s3223_s14 + $0x3a8] ss:$16 sps:$4 sm:$0xff]   ;;  %v2842_v19 = vld [vmem:[%s3223_s14 + $0x18c] ss:$16 sps:$4 sm:$0xff]  }
 0x24d   : > { %1429 = vmatprep.mubr.bf16.mxu0 %v610_v6  ;;  %1470 = vmatprep.mubr.bf16.mxu1 %v612_v27  ;;  %v2845_v20 = vld [vmem:[%s3223_s14 + $0x38c] ss:$16 sps:$4 sm:$0xff]   ;;  %v2840_v21 = vld [vmem:[%s3223_s14 + $0x188] ss:$16 sps:$4 sm:$0xff]  }
 0x24e   : > { %1430 = vmatmul.mubr.bf16.vlgmr.msra.gmra.mxu0 %v3402_v29  ;;  %1471 = vmatmul.mubr.bf16.vlgmr.msra.gmra.mxu1 %v3404_v30  ;;  %v2843_v22 = vld [vmem:[%s3223_s14 + $0x388] ss:$16 sps:$4 sm:$0xff]   ;;  %v2848_v23 = vld [vmem:[%s3223_s14 + $0x16c] ss:$16 sps:$4 sm:$0xff]  }
 0x24f   : > { %1480 = vmatpush1.bf16.msra.mxu0 %v2774_v13  ;;  %1521 = vmatpush1.bf16.msra.mxu1 %v2777_v28  ;;  %v2851_v24 = vld [vmem:[%s3223_s14 + $0x36c] ss:$16 sps:$4 sm:$0xff]   ;;  %v2846_v25 = vld [vmem:[%s3223_s14 + $0x168] ss:$16 sps:$4 sm:$0xff]  }
 0x250   : > { %1511 = vmatprep.mubr.bf16.mxu0 %v610_v6  ;;  %1552 = vmatprep.mubr.bf16.mxu1 %v612_v27  ;;  %v2849_v12 = vld [vmem:[%s3223_s14 + $0x368] ss:$16 sps:$4 sm:$0xff]   ;;  %v2854_v26 = vld [vmem:[%s3223_s14 + $0x14c] ss:$16 sps:$4 sm:$0xff]  }
 0x251   : > { %1481 = vmatprep.subr.bf16.mxu0 %v2782_v31  ;;  %1522 = vmatprep.subr.bf16.mxu1 %v2785_v32  ;;  %v2857_v14 = vld [vmem:[%s3223_s14 + $0x34c] ss:$16 sps:$4 sm:$0xff]   ;;  %v2852_v6 = vld [vmem:[%s3223_s14 + $0x148] ss:$16 sps:$4 sm:$0xff]  }
 0x252   : > { %v2855_v27 = vld [vmem:[%s3223_s14 + $0x348] ss:$16 sps:$4 sm:$0xff]   ;;  %v2860_v13 = vld [vmem:[%s3223_s14 + $0x12c] ss:$16 sps:$4 sm:$0xff]  }
 0x253   : > { %1482 = vmatpush1.bf16.msra.mxu0 %v2780_v33  ;;  %1523 = vmatpush1.bf16.msra.mxu1 %v2783_v34  ;;  %v2863_v28 = vld [vmem:[%s3223_s14 + $0x32c] ss:$16 sps:$4 sm:$0xff]   ;;  %v2858_v31 = vld [vmem:[%s3223_s14 + $0x128] ss:$16 sps:$4 sm:$0xff]  }
 0x254   : > { %1483 = vmatprep.subr.bf16.mxu0 %v2788_v35  ;;  %1524 = vmatprep.subr.bf16.mxu1 %v2791_v36  ;;  %v2861_v32 = vld [vmem:[%s3223_s14 + $0x328] ss:$16 sps:$4 sm:$0xff]   ;;  %v2866_v33 = vld [vmem:[%s3223_s14 + $0x10c] ss:$16 sps:$4 sm:$0xff]  }
 0x255   : > { %v2869_v34 = vld [vmem:[%s3223_s14 + $0x30c] ss:$16 sps:$4 sm:$0xff]   ;;  %v2864_v35 = vld [vmem:[%s3223_s14 + $0x108] ss:$16 sps:$4 sm:$0xff]  }
 0x256   : > { %v2867_v36 = vld [vmem:[%s3223_s14 + $0x308] ss:$16 sps:$4 sm:$0xff]  }
 0x257   : > { %1484 = vmatpush1.bf16.msra.mxu0 %v2786_v37  ;;  %1525 = vmatpush1.bf16.msra.mxu1 %v2789_v38 }
 0x258   : > { %1485 = vmatprep.subr.bf16.mxu0 %v2794_v39  ;;  %1526 = vmatprep.subr.bf16.mxu1 %v2797_v40 }
 0x25b   : > { %1486 = vmatpush1.bf16.msra.mxu0 %v2792_v41  ;;  %1527 = vmatpush1.bf16.msra.mxu1 %v2795_v42 }
 0x25c   : > { %1487 = vmatprep.subr.bf16.mxu0 %v2800_v43  ;;  %1528 = vmatprep.subr.bf16.mxu1 %v2803_v44 }
 0x25f   : > { %1488 = vmatpush1.bf16.msra.mxu0 %v2798_v45  ;;  %1529 = vmatpush1.bf16.msra.mxu1 %v2801_v46  ;;  %v743_v45 = vsub.s32 3, %v3246_v7 }
 0x260   : > { %1489 = vmatprep.subr.bf16.mxu0 %v2806_v47  ;;  %1530 = vmatprep.subr.bf16.mxu1 %v2809_v48 }
 0x261   : > { %v748_v46 = vrot.slane %v3260_v10, %v743_v45  ;;  %v744_v47 = vrot.slane %v3257_v9, %v743_v45 }
 0x263   : > { %1490 = vmatpush1.bf16.msra.mxu0 %v2804_v49  ;;  %1531 = vmatpush1.bf16.msra.mxu1 %v2807_v50 }
 0x264   : > { %1491 = vmatprep.subr.bf16.mxu0 %v2812_v51  ;;  %1532 = vmatprep.subr.bf16.mxu1 %v2815_v52 }
 0x267   : > { %1492 = vmatpush1.bf16.msra.mxu0 %v2810_v53  ;;  %1533 = vmatpush1.bf16.msra.mxu1 %v2813_v54 }
 0x268   : > { %1493 = vmatprep.subr.bf16.mxu0 %v2818_v55  ;;  %1534 = vmatprep.subr.bf16.mxu1 %v2821_v58 }
 0x26b   : > { %1494 = vmatpush1.bf16.msra.mxu0 %v2816_v59  ;;  %1535 = vmatpush1.bf16.msra.mxu1 %v2819_v60 }
 0x26c   : > { %1495 = vmatprep.subr.bf16.mxu0 %v2824_v61  ;;  %1536 = vmatprep.subr.bf16.mxu1 %v2827_v62 }
 0x26f   : > { %1496 = vmatpush2.bf16.msra.mxu0 %v2822_v63  ;;  %1537 = vmatpush2.bf16.msra.mxu1 %v2825_v0 }
 0x270   : > { %1497 = vmatprep.subr.bf16.mxu0 %v2830_v1  ;;  %1538 = vmatprep.subr.bf16.mxu1 %v2833_v2  ;;  %v2870_v1 = vld [vmem:[%s3229_s18 + $0x70] ss:$8 sps:$4 sm:$0xff]   ;;  %v2872_v2 = vld [vmem:[%s3229_s18 + $0x74] ss:$8 sps:$4 sm:$0xff]  }
 0x273   : > { %1498 = vmatpush2.bf16.msra.mxu0 %v2828_v3  ;;  %1539 = vmatpush2.bf16.msra.mxu1 %v2831_v4  ;;  %v2873_v3 = vld [vmem:[%s3229_s18 + $0x170] ss:$8 sps:$4 sm:$0xff]   ;;  %v2875_v4 = vld [vmem:[%s3229_s18 + $0x174] ss:$8 sps:$4 sm:$0xff]  }
 0x274   : > { %1499 = vmatprep.subr.bf16.mxu0 %v2836_v5  ;;  %1540 = vmatprep.subr.bf16.mxu1 %v2839_v16  ;;  %v2878_v5 = vld [vmem:[%s3229_s18 + $0x64] ss:$8 sps:$4 sm:$0xff]  }
 0x275   : > { %v2881_v16 = vld [vmem:[%s3229_s18 + $0x164] ss:$8 sps:$4 sm:$0xff]  }
 0x277   : > { %1500 = vmatpush2.bf16.msra.mxu0 %v2834_v17  ;;  %1541 = vmatpush2.bf16.msra.mxu1 %v2837_v18  ;;  %v2876_v17 = vld [vmem:[%s3229_s18 + $0x60] ss:$8 sps:$4 sm:$0xff]  }
 0x278   : > { %1501 = vmatprep.subr.bf16.mxu0 %v2842_v19  ;;  %1542 = vmatprep.subr.bf16.mxu1 %v2845_v20  ;;  %v2879_v18 = vld [vmem:[%s3229_s18 + $0x160] ss:$8 sps:$4 sm:$0xff]   ;;  %v2884_v19 = vld [vmem:[%s3229_s18 + $0x54] ss:$8 sps:$4 sm:$0xff]  }
 0x279   : > { %v2887_v20 = vld [vmem:[%s3229_s18 + $0x154] ss:$8 sps:$4 sm:$0xff]  }
 0x27b   : > { %1502 = vmatpush2.bf16.msra.mxu0 %v2840_v21  ;;  %1543 = vmatpush2.bf16.msra.mxu1 %v2843_v22  ;;  %v2882_v21 = vld [vmem:[%s3229_s18 + $0x50] ss:$8 sps:$4 sm:$0xff]  }
 0x27c   : > { %1503 = vmatprep.subr.bf16.mxu0 %v2848_v23  ;;  %1544 = vmatprep.subr.bf16.mxu1 %v2851_v24  ;;  %v2885_v22 = vld [vmem:[%s3229_s18 + $0x150] ss:$8 sps:$4 sm:$0xff]   ;;  %v2890_v23 = vld [vmem:[%s3229_s18 + $0x44] ss:$8 sps:$4 sm:$0xff]  }
 0x27d   : > { %v2893_v24 = vld [vmem:[%s3229_s18 + $0x144] ss:$8 sps:$4 sm:$0xff]  }
 0x27f   : > { %1504 = vmatpush2.bf16.msra.mxu0 %v2846_v25  ;;  %1545 = vmatpush2.bf16.msra.mxu1 %v2849_v12  ;;  %v2888_v25 = vld [vmem:[%s3229_s18 + $0x40] ss:$8 sps:$4 sm:$0xff]  }
 0x280   : > { %1505 = vmatprep.subr.bf16.mxu0 %v2854_v26  ;;  %1546 = vmatprep.subr.bf16.mxu1 %v2857_v14  ;;  %v2891_v12 = vld [vmem:[%s3229_s18 + $0x140] ss:$8 sps:$4 sm:$0xff]   ;;  %v2896_v26 = vld [vmem:[%s3229_s18 + $0x34] ss:$8 sps:$4 sm:$0xff]  }
 0x281   : > { %v2899_v14 = vld [vmem:[%s3229_s18 + $0x134] ss:$8 sps:$4 sm:$0xff]  }
 0x283   : > { %1506 = vmatpush2.bf16.msra.mxu0 %v2852_v6  ;;  %1547 = vmatpush2.bf16.msra.mxu1 %v2855_v27  ;;  %v2894_v6 = vld [vmem:[%s3229_s18 + $0x30] ss:$8 sps:$4 sm:$0xff]  }
 0x284   : > { %1507 = vmatprep.subr.bf16.mxu0 %v2860_v13  ;;  %1548 = vmatprep.subr.bf16.mxu1 %v2863_v28  ;;  %v2897_v27 = vld [vmem:[%s3229_s18 + $0x130] ss:$8 sps:$4 sm:$0xff]   ;;  %v2902_v13 = vld [vmem:[%s3229_s18 + $0x24] ss:$8 sps:$4 sm:$0xff]  }
 0x285   : > { %v2905_v28 = vld [vmem:[%s3229_s18 + $0x124] ss:$8 sps:$4 sm:$0xff]  }
 0x287   : > { %1508 = vmatpush2.bf16.msra.mxu0 %v2858_v31  ;;  %1549 = vmatpush2.bf16.msra.mxu1 %v2861_v32  ;;  %v2900_v31 = vld [vmem:[%s3229_s18 + $0x20] ss:$8 sps:$4 sm:$0xff]  }
 0x288   : > { %1509 = vmatprep.subr.bf16.mxu0 %v2866_v33  ;;  %1550 = vmatprep.subr.bf16.mxu1 %v2869_v34  ;;  %v2903_v32 = vld [vmem:[%s3229_s18 + $0x120] ss:$8 sps:$4 sm:$0xff]   ;;  %v2908_v33 = vld [vmem:[%s3229_s18 + $0x14] ss:$8 sps:$4 sm:$0xff]  }
 0x289   : > { %v2911_v34 = vld [vmem:[%s3229_s18 + $0x114] ss:$8 sps:$4 sm:$0xff]  }
 0x28b   : > { %1510 = vmatpush2.bf16.msra.mxu0 %v2864_v35  ;;  %1551 = vmatpush2.bf16.msra.mxu1 %v2867_v36  ;;  %v2906_v35 = vld [vmem:[%s3229_s18 + $0x10] ss:$8 sps:$4 sm:$0xff]  }
 0x28c   : > { %2027 = vmatprep.subr.bf16.mxu0 %v2872_v2  ;;  %2068 = vmatprep.subr.bf16.mxu1 %v2875_v4  ;;  %v2909_v36 = vld [vmem:[%s3229_s18 + $0x110] ss:$8 sps:$4 sm:$0xff]   ;;  %v2944_v2 = vld [vmem:[%s3229_s18 + $0xb4] ss:$8 sps:$4 sm:$0xff]  }
 0x28d   : > { %v2942_v4 = vld [vmem:[%s3229_s18 + $0xb0] ss:$8 sps:$4 sm:$0xff]  }
 0x28e   : > { %1512 = vmatmul.mubr.bf16.vlgmr.msra.gmra.mxu0 %v3402_v29  ;;  %1553 = vmatmul.mubr.bf16.vlgmr.msra.gmra.mxu1 %v3404_v30  ;;  %v752_v29 = vrot.slane %v3263_v11, %v743_v45  ;;  %v756_v30 = vrot.slane %v3272_v15, %v743_v45 }
 0x28f   : > { %2028 = vmatpush1.bf16.msra.mxu0 %v2870_v1  ;;  %2069 = vmatpush1.bf16.msra.mxu1 %v2873_v3  ;;  %v2939_v1 = vld [vmem:[%s3229_s18 + $0x1c0] ss:$8 sps:$4 sm:$0xff]   ;;  %v2947_v3 = vld [vmem:[%s3229_s18 + $0x1b4] ss:$8 sps:$4 sm:$0xff]  }
 0x290   : > { %2029 = vmatprep.subr.bf16.mxu0 %v2878_v5  ;;  %2070 = vmatprep.subr.bf16.mxu1 %v2881_v16  ;;  %v2945_v5 = vld [vmem:[%s3229_s18 + $0x1b0] ss:$8 sps:$4 sm:$0xff]   ;;  %v2950_v16 = vld [vmem:[%s3229_s18 + $0xa4] ss:$8 sps:$4 sm:$0xff]  }
 0x293   : > { %2030 = vmatpush1.bf16.msra.mxu0 %v2876_v17  ;;  %2071 = vmatpush1.bf16.msra.mxu1 %v2879_v18  ;;  %v2953_v17 = vld [vmem:[%s3229_s18 + $0x1a4] ss:$8 sps:$4 sm:$0xff]   ;;  %v2948_v18 = vld [vmem:[%s3229_s18 + $0xa0] ss:$8 sps:$4 sm:$0xff]  }
 0x294   : > { %2031 = vmatprep.subr.bf16.mxu0 %v2884_v19  ;;  %2072 = vmatprep.subr.bf16.mxu1 %v2887_v20  ;;  %v2951_v19 = vld [vmem:[%s3229_s18 + $0x1a0] ss:$8 sps:$4 sm:$0xff]   ;;  %v2956_v20 = vld [vmem:[%s3229_s18 + $0x94] ss:$8 sps:$4 sm:$0xff]  }
 0x297   : > { %2032 = vmatpush1.bf16.msra.mxu0 %v2882_v21  ;;  %2073 = vmatpush1.bf16.msra.mxu1 %v2885_v22  ;;  %v2959_v21 = vld [vmem:[%s3229_s18 + $0x194] ss:$8 sps:$4 sm:$0xff]   ;;  %v2954_v22 = vld [vmem:[%s3229_s18 + $0x90] ss:$8 sps:$4 sm:$0xff]  }
 0x298   : > { %2033 = vmatprep.subr.bf16.mxu0 %v2890_v23  ;;  %2074 = vmatprep.subr.bf16.mxu1 %v2893_v24  ;;  %v2957_v23 = vld [vmem:[%s3229_s18 + $0x190] ss:$8 sps:$4 sm:$0xff]   ;;  %v2962_v24 = vld [vmem:[%s3229_s18 + $0x84] ss:$8 sps:$4 sm:$0xff]  }
 0x29b   : > { %2034 = vmatpush1.bf16.msra.mxu0 %v2888_v25  ;;  %2075 = vmatpush1.bf16.msra.mxu1 %v2891_v12  ;;  %v2965_v25 = vld [vmem:[%s3229_s18 + $0x184] ss:$8 sps:$4 sm:$0xff]   ;;  %v2960_v12 = vld [vmem:[%s3229_s18 + $0x80] ss:$8 sps:$4 sm:$0xff]  }
 0x29c   : > { %2035 = vmatprep.subr.bf16.mxu0 %v2896_v26  ;;  %2076 = vmatprep.subr.bf16.mxu1 %v2899_v14  ;;  %v2963_v26 = vld [vmem:[%s3229_s18 + $0x180] ss:$8 sps:$4 sm:$0xff]  }
 0x29f   : > { %2036 = vmatpush1.bf16.msra.mxu0 %v2894_v6  ;;  %2077 = vmatpush1.bf16.msra.mxu1 %v2897_v27 }
 0x2a0   : > { %2037 = vmatprep.subr.bf16.mxu0 %v2902_v13  ;;  %2078 = vmatprep.subr.bf16.mxu1 %v2905_v28  ;;  %v1589_v13 = vsub.s32 4, %v3246_v7  ;;  %v1609_v28 = vsub.s32 5, %v3246_v7 }
 0x2a3   : > { %2038 = vmatpush1.bf16.msra.mxu0 %v2900_v31  ;;  %2079 = vmatpush1.bf16.msra.mxu1 %v2903_v32  ;;  %v2972_v31 = vld [vmem:[%s3251_s19 + $0x8] sm:$0x3f] }
 0x2a4   : > { %2039 = vmatprep.subr.bf16.mxu0 %v2908_v33  ;;  %2080 = vmatprep.subr.bf16.mxu1 %v2911_v34  ;;  %v1594_v32 = vrot.slane %v2972_v31, %v1589_v13  ;;  %v2973_v33 = vld [vmem:[%s3251_s19 + $0x18] sm:$0x3f] }
 0x2a5   : > { %v1602_v34 = vrot.slane %v2973_v33, %v1589_v13 }
 0x2a7   : > { %2040 = vmatpush1.bf16.msra.mxu0 %v2906_v35  ;;  %2081 = vmatpush1.bf16.msra.mxu1 %v2909_v36  ;;  %v2974_v35 = vld [vmem:[%s3251_s19] sm:$0x3f] }
 0x2a8   : > { %v1590_v36 = vrot.slane %v2974_v35, %v1589_v13 }
 0x30e   : > { %v1431_v37 = vpop.f32.mrf.mxu0  ;;  %v1472_v38 = vpop.f32.mrf.mxu1 }
 0x30f   : > { %v1432_v49 = vadd.f32 %v1431_v37, %v744_v47  ;;  %v2914_v37 = vld [vmem:[%s3229_s18 + $0x4] ss:$8 sps:$4 sm:$0xff]  }
 0x310   : > { %v1433_v39 = vpop.f32.mrf.mxu0  ;;  %v1474_v40 = vpop.f32.mrf.mxu1  ;;  %2041 = vmatprep.subr.bf16.mxu0 %v2914_v37  ;;  %v2975_v37 = vld [vmem:[%s3251_s19 + $0x10] sm:$0x3f] }
 0x311   : > { %v1434_v48 = vadd.f32 %v1433_v39, %v748_v46  ;;  %v3477_v53 = vadd.f32 %v1472_v38, %v1432_v49  ;;  %v2917_v38 = vld [vmem:[%s3229_s18 + $0x104] ss:$8 sps:$4 sm:$0xff]   ;;  %v2912_v39 = vld [vmem:[%s3229_s18] ss:$8 sps:$4 sm:$0xff]  }
 0x312   : > { %v1435_v41 = vpop.f32.mrf.mxu0  ;;  %v1476_v42 = vpop.f32.mrf.mxu1  ;;  %2082 = vmatprep.subr.bf16.mxu1 %v2917_v38  ;;  %2042 = vmatpush1.bf16.msra.mxu0 %v2912_v39  ;;  %v1598_v38 = vrot.slane %v2975_v37, %v1589_v13 }
 0x313   : > { %v3474_v50 = vadd.f32 %v1474_v40, %v1434_v48  ;;  %v2915_v40 = vld [vmem:[%s3229_s18 + $0x100] ss:$8 sps:$4 sm:$0xff]   ;;  %v2920_v41 = vld [vmem:[%s3229_s18 + $0xf4] ss:$8 sps:$4 sm:$0xff]  }
 0x314   : > { %v1436_v43 = vpop.f32.mrf.mxu0  ;;  %v1477_v44 = vpop.f32.mrf.mxu1  ;;  %v2923_v42 = vld [vmem:[%s3229_s18 + $0x1f4] ss:$8 sps:$4 sm:$0xff]   ;;  %2083 = vmatpush1.bf16.msra.mxu1 %v2915_v40  ;;  %2043 = vmatprep.subr.bf16.mxu0 %v2920_v41  ;;  %v1614_v40 = vrot.slane %v2972_v31, %v1609_v28  ;;  %v1622_v41 = vrot.slane %v2973_v33, %v1609_v28 }
 0x315   : > { %v1561_v9 = vadd.f32 %v3474_v50, %v3477_v53  ;;  %v2918_v43 = vld [vmem:[%s3229_s18 + $0xf0] ss:$8 sps:$4 sm:$0xff]   ;;  %2084 = vmatprep.subr.bf16.mxu1 %v2923_v42  ;;  %v1610_v42 = vrot.slane %v2974_v35, %v1609_v28 }
 0x316   : > { %v2921_v44 = vld [vmem:[%s3229_s18 + $0x1f0] ss:$8 sps:$4 sm:$0xff]   ;;  %2044 = vmatpush2.bf16.msra.mxu0 %v2918_v43  ;;  %v1618_v43 = vrot.slane %v2975_v37, %v1609_v28 }
 0x318   : > { %2085 = vmatpush2.bf16.msra.mxu1 %v2921_v44 }
 0x34e   : > { %v1513_v51 = vpop.f32.mrf.mxu0  ;;  %v1554_v52 = vpop.f32.mrf.mxu1 }
 0x34f   : > { %v1514_v54 = vadd.f32 %v1513_v51, %v752_v29 }
 0x350   : > { %v1515_v55 = vpop.f32.mrf.mxu0  ;;  %v1556_v10 = vpop.f32.mrf.mxu1 }
 0x351   : > { %v3481_v11 = vadd.f32 %v1554_v52, %v1514_v54  ;;  %v1516_v58 = vadd.f32 %v1515_v55, %v756_v30 }
 0x352   : > { %v1517_v15 = vpop.f32.mrf.mxu0  ;;  %v1558_v59 = vpop.f32.mrf.mxu1 }
 0x353   : > { %v3483_v60 = vadd.f32 %v1556_v10, %v1516_v58  ;;  %v1562_v61 = vadd.f32 %v1561_v9, %v3481_v11  ;;  %v2926_v10 = vld [vmem:[%s3229_s18 + $0xe4] ss:$8 sps:$4 sm:$0xff]   ;;  %v2927_v58 = vld [vmem:[%s3229_s18 + $0x1e0] ss:$8 sps:$4 sm:$0xff]   ;;  %v2932_v15 = vld [vmem:[%s3229_s18 + $0xd4] ss:$8 sps:$4 sm:$0xff]  }
 0x354   : > { %v1518_v62 = vpop.f32.mrf.mxu0  ;;  %v1559_v63 = vpop.f32.mrf.mxu1  ;;  %v2929_v9 = vld [vmem:[%s3229_s18 + $0x1e4] ss:$8 sps:$4 sm:$0xff]   ;;  %2045 = vmatprep.subr.bf16.mxu0 %v2926_v10  ;;  %v2935_v59 = vld [vmem:[%s3229_s18 + $0x1d4] ss:$8 sps:$4 sm:$0xff]  }
 0x355   : > { %v1563_v0 = vadd.f32 %v1562_v61, %v3483_v60  ;;  %2086 = vmatprep.subr.bf16.mxu1 %v2929_v9  ;;  %v2933_v61 = vld [vmem:[%s3229_s18 + $0x1d0] ss:$8 sps:$4 sm:$0xff]   ;;  %v2938_v62 = vld [vmem:[%s3229_s18 + $0xc4] ss:$8 sps:$4 sm:$0xff]  }
 0x356   : > { %2087 = vmatpush2.bf16.msra.mxu1 %v2927_v58  ;;  %v2941_v63 = vld [vmem:[%s3229_s18 + $0x1c4] ss:$8 sps:$4 sm:$0xff]  }
 0x357   : > { %1564 = vadd.xlane.f32.xlu1 %v1563_v0  ;;  %2088 = vmatprep.subr.bf16.mxu1 %v2935_v59  ;;  %v2936_v0 = vld [vmem:[%s3229_s18 + $0xc0] ss:$8 sps:$4 sm:$0xff]  }
 0x35a   : > { %2089 = vmatpush2.bf16.msra.mxu1 %v2933_v61 }
 0x35b   : > { %2090 = vmatprep.subr.bf16.mxu1 %v2941_v63 }
 0x35e   : > { %2091 = vmatpush2.bf16.msra.mxu1 %v2939_v1 }
 0x35f   : > { %2092 = vmatprep.subr.bf16.mxu1 %v2947_v3 }
 0x362   : > { %2093 = vmatpush2.bf16.msra.mxu1 %v2945_v5 }
 0x363   : > { %2094 = vmatprep.subr.bf16.mxu1 %v2953_v17 }
 0x366   : > { %2095 = vmatpush2.bf16.msra.mxu1 %v2951_v19 }
 0x367   : > { %2096 = vmatprep.subr.bf16.mxu1 %v2959_v21 }
 0x36a   : > { %2097 = vmatpush2.bf16.msra.mxu1 %v2957_v23 }
 0x36b   : > { %2098 = vmatprep.subr.bf16.mxu1 %v2965_v25 }
 0x36e   : > { %2099 = vmatpush2.bf16.msra.mxu1 %v2963_v26 }
 0x3e0   : > { %v1565_v45 = vpop.xlane.xlu1 %1564 }
 0x3e1   : > { %v1566_v46 = vmul.f32 0.001953125, %v1565_v45 }
 0x3e3   : > { %v3524_v47 = vsub.f32 %v3477_v53, %v1566_v46  ;;  %v3527_v48 = vsub.f32 %v3474_v50, %v1566_v46  ;;  %v3530_v49 = vsub.f32 %v3481_v11, %v1566_v46  ;;  %v3533_v29 = vsub.f32 %v3483_v60, %v1566_v46  ;;  %v2924_v11 = vld [vmem:[%s3229_s18 + $0xe0] ss:$8 sps:$4 sm:$0xff]   ;;  %v2930_v60 = vld [vmem:[%s3229_s18 + $0xd0] ss:$8 sps:$4 sm:$0xff]  }
 0x3e4   : > { %2046 = vmatpush2.bf16.msra.mxu0 %v2924_v11 }
 0x3e5   : > { %v1571_v30 = vmul.f32 %v3524_v47, %v3524_v47  ;;  %v1572_v51 = vmul.f32 %v3527_v48, %v3527_v48  ;;  %v1573_v52 = vmul.f32 %v3530_v49, %v3530_v49  ;;  %v1574_v53 = vmul.f32 %v3533_v29, %v3533_v29  ;;  %2047 = vmatprep.subr.bf16.mxu0 %v2932_v15 }
 0x3e7   : > { %v1575_v50 = vadd.f32 %v1572_v51, %v1571_v30 }
 0x3e8   : > { %2048 = vmatpush2.bf16.msra.mxu0 %v2930_v60 }
 0x3e9   : > { %v1576_v54 = vadd.f32 %v1575_v50, %v1573_v52  ;;  %2049 = vmatprep.subr.bf16.mxu0 %v2938_v62 }
 0x3eb   : > { %v1577_v55 = vadd.f32 %v1576_v54, %v1574_v53 }
 0x3ec   : > { %2050 = vmatpush2.bf16.msra.mxu0 %v2936_v0 }
 0x3ed   : > { %1578 = vadd.xlane.f32.xlu1 %v1577_v55  ;;  %2051 = vmatprep.subr.bf16.mxu0 %v2944_v2 }
 0x3f0   : > { %2052 = vmatpush2.bf16.msra.mxu0 %v2942_v4 }
 0x3f1   : > { %2053 = vmatprep.subr.bf16.mxu0 %v2950_v16 }
 0x3f4   : > { %2054 = vmatpush2.bf16.msra.mxu0 %v2948_v18 }
 0x3f5   : > { %2055 = vmatprep.subr.bf16.mxu0 %v2956_v20 }
 0x3f8   : > { %2056 = vmatpush2.bf16.msra.mxu0 %v2954_v22 }
 0x3f9   : > { %2057 = vmatprep.subr.bf16.mxu0 %v2962_v24 }
 0x3fc   : > { %2058 = vmatpush2.bf16.msra.mxu0 %v2960_v12 }
 0x476   : > { %v1579_v14 = vpop.xlane.xlu1 %1578 }
 0x477   : > { %v1580_v6 = vmul.f32 0.001953125, %v1579_v14 }
 0x479   : > { %v1581_v27 = vadd.f32 1e-05, %v1580_v6 }
 0x47b   : > { %2968 = vrsqrt.f32 %v1581_v27 }
 0x488   : > { %v2969_v39 = vpop.eup %2968 }
 0x489   : > { %v1584_v44 = vmul.f32 %v2969_v39, %v3527_v48  ;;  %v1586_v45 = vmul.f32 %v2969_v39, %v3533_v29  ;;  %v1583_v46 = vmul.f32 %v2969_v39, %v3524_v47  ;;  %v1585_v7 = vmul.f32 %v2969_v39, %v3530_v49  ;;  %v411_v47 = vld [vmem:[%s398_s11] sm:$0x1f]  ;;  %v412_v49 = vld [vmem:[%s398_s11 + $0x8] sm:$0x1f] }
 0x48a   : > { %v1702_v61 = vrot.slane %v411_v47, %v3254_v8  ;;  %v1706_v62 = vrot.slane %v412_v49, %v3254_v8  ;;  %v2153_v14 = vrot.slane %v412_v49, 3  ;;  %v2132_v28 = vrot.slane %v412_v49, %v3375_v56 }
 0x48b   : > { %v1604_v30 = vmul.f32 %v1594_v32, %v1584_v44  ;;  %v1606_v51 = vmul.f32 %v1602_v34, %v1586_v45  ;;  %v1603_v52 = vmul.f32 %v1590_v36, %v1583_v46  ;;  %v1605_v50 = vmul.f32 %v1598_v38, %v1585_v7 }
 0x48c   : > { %v2128_v31 = vrot.slane %v411_v47, %v3375_v56  ;;  %v2142_v34 = vrot.slane %v412_v49, %v3378_v57  ;;  %v2138_v36 = vrot.slane %v411_v47, %v3378_v57 }
 0x48d   : > { %v1624_v53 = vadd.f32 %v1614_v40, %v1604_v30  ;;  %v1626_v54 = vadd.f32 %v1622_v41, %v1606_v51  ;;  %v1623_v55 = vadd.f32 %v1610_v42, %v1603_v52  ;;  %v1625_v10 = vadd.f32 %v1618_v43, %v1605_v50 }
 0x48e   : > { %v2152_v43 = vrot.slane %v411_v47, 3 }
 0x48f   : > { %v1628_v9 = vmax.f32 %v1624_v53, 0.0  ;;  %v1630_v11 = vmax.f32 %v1626_v54, 0.0  ;;  %v1627_v58 = vmax.f32 %v1623_v55, 0.0  ;;  %v1629_v15 = vmax.f32 %v1625_v10, 0.0 }
 0x491   : > { %v1632_v48 = vpack.c.bf16 %v1628_v9, %v1628_v9  ;;  %v1634_v59 = vpack.c.bf16 %v1630_v11, %v1630_v11  ;;  %v1631_v29 = vpack.c.bf16 %v1627_v58, %v1627_v58  ;;  %v1633_v60 = vpack.c.bf16 %v1629_v15, %v1629_v15 }
 0x493   : > { %2059 = vmatprep.mubr.bf16.mxu0 %v1632_v48  ;;  %2100 = vmatprep.mubr.bf16.mxu1 %v1634_v59 }
 0x494   : > { %2060 = vmatmul.mubr.bf16.vlgmr.msra.gmra.mxu0 %v1631_v29  ;;  %2101 = vmatmul.mubr.bf16.vlgmr.msra.gmra.mxu1 %v1633_v60 }
 0x495   : > { %2222 = vmatprep.mubr.f32.mxu0 %v2153_v14 }
 0x554   : > { %v2061_v63 = vpop.f32.mrf.mxu0  ;;  %v2102_v0 = vpop.f32.mrf.mxu1 }
 0x555   : > { %v2062_v1 = vadd.f32 %v2061_v63, %v1702_v61 }
 0x556   : > { %v2063_v2 = vpop.f32.mrf.mxu0  ;;  %v2104_v3 = vpop.f32.mrf.mxu1 }
 0x557   : > { %v2064_v4 = vadd.f32 %v2063_v2, %v1706_v62  ;;  %v2103_v17 = vadd.f32 %v2102_v0, %v2062_v1 }
 0x558   : > { %v2065_v5 = vpop.f32.mrf.mxu0  ;;  %v2106_v16 = vpop.f32.mrf.mxu1 }
 0x559   : > { %v2105_v18 = vadd.f32 %v2104_v3, %v2064_v4 }
 0x55a   : > { %v2066_v19 = vpop.f32.mrf.mxu0  ;;  %v2107_v20 = vpop.f32.mrf.mxu1 }
 0x55b   : > { %v2109_v21 = vadd.f32 %v2105_v18, %v2103_v17 }
 0x55d   : > { %2110 = vadd.xlane.f32.xlu0 %v2109_v21 }
 0x573   : > { %2149 = vperm.xlu0 %2671, %v411_v47  }
 0x5e6   : > { %v2111_v22 = vpop.xlane.xlu0 %2110 }
 0x5e7   : > { %v2112_v23 = vmul.f32 0.00390625, %v2111_v22 }
 0x5e9   : > { %v2113_v24 = vsub.f32 %v2103_v17, %v2112_v23  ;;  %v2114_v25 = vsub.f32 %v2105_v18, %v2112_v23 }
 0x5eb   : > { %v2115_v8 = vmul.f32 %v2113_v24, %v2113_v24  ;;  %v2116_v12 = vmul.f32 %v2114_v25, %v2114_v25 }
 0x5ed   : > { %v2117_v26 = vadd.f32 %v2116_v12, %v2115_v8 }
 0x5ee   : > { %v2150_v44 = vpop.permute.xlu0 %2149 }
 0x5ef   : > { %2118 = vadd.xlane.f32.xlu1 %v2117_v26  ;;  %v2156_v56 = vrot.slane %v2150_v44, 4 }
 0x678   : > { %v2119_v6 = vpop.xlane.xlu1 %2118 }
 0x679   : > { %v2120_v27 = vmul.f32 0.00390625, %v2119_v6 }
 0x67b   : > { %v2121_v13 = vadd.f32 1e-05, %v2120_v27 }
 0x67d   : > { %2970 = vrsqrt.f32 %v2121_v13 }
 0x68a   : > { %v2971_v32 = vpop.eup %2970 }
 0x68b   : > { %v2124_v33 = vmul.f32 %v2971_v32, %v2114_v25  ;;  %v2123_v35 = vmul.f32 %v2971_v32, %v2113_v24 }
 0x68d   : > { %v2134_v37 = vmul.f32 %v2132_v28, %v2124_v33  ;;  %v2133_v38 = vmul.f32 %v2128_v31, %v2123_v35 }
 0x68f   : > { %v2144_v39 = vadd.f32 %v2142_v34, %v2134_v37  ;;  %v2143_v40 = vadd.f32 %v2138_v36, %v2133_v38 }
 0x691   : > { %v2146_v41 = vmax.f32 %v2144_v39, 0.0  ;;  %v2145_v42 = vmax.f32 %v2143_v40, 0.0 }
 0x693   : > { %2188 = vmatprep.subr.mxu0 %v2146_v41 }
 0x694   : > { %2189 = vmatpush1.xpose.msra.mxu0 %v2145_v42 }
 0x697   : > { %2223 = vmatmul.mubr.f32.vlgmr.msra.gmra.mxu0 %v2152_v43 }
 0x757   : > { %v2224_v45 = vpop.f32.mrf.mxu0 }
 0x758   : > { %v2225_v46 = vadd.f32 %v2224_v45, %v2156_v56 }
 0x759   : > { %v2226_v57 = vpop.f32.mrf.mxu0 }
 0x75a   : > { %2229 = vst.msk [vmem:[%s404_s2] sm:$0x1] %vm2228_vm1, %v2225_v46 }
 0x75b PF: > { %s22_s26 = sadd.s32 1, %s3086_s26   ;;  %s3626_s21 = smov %s3070_s22 }
 0x75c   : > { %p19_p7 = scmp.ge.s32.totalorder %s22_s26, 4   ;;  %s3627_s22 = smov %s3074_s23 }
 0x75d   : > { %s3628_s23 = smov %s3179_s9  ;;  %s3629_s24 = smov %s3082_s25 }
 0x75e   : > { %s3630_s25 = smov %s3632_s28  ;;  %21 = sbr.rel (!%p19_p7) target bundleno = 8 (0x8), region = 109 }
 0x763   :  { %2253 = vsyncpa [#allocation3], 1 }
 0x764   :  { %2255 = vsyncpa [#allocation3 + $0x1], 1 }
 0x765   :  { %2256 = vsyncpa [#allocation5], 1 }
 0x766   :  { %2258 = vsyncpa [#allocation5 + $0x1], 1 }

</bundles_post_ra>
